<compile_context>
chip_gen: v5e
topology: v5e:2x2
jax: 0.10.0
libtpu: 0.0.40
codegen_flags: <defaults>
</compile_context>

<pallas_src>
import functools

import jax
import jax.numpy as jnp
from jax.experimental import pallas as pl
from jax.experimental.pallas import tpu as pltpu

HIDDEN_L1 = 512      # first linear output width
OUT_DIM = 784        # 28 * 28
OUT_DIM_PAD = 896    # 7 * 128 -> lane-dense output tiles (zero-padded columns 784..895)


def decoder_kernel(z_ref, w1_ref, b1_ref, w2_ref, b2_ref, o_ref):
    # Two MXU matmuls (bf16 inputs, f32 accumulation) + VPU bias/ReLU + EUP sigmoid.
    z = z_ref[...].astype(jnp.bfloat16)                       # (TB, H) bf16 for MXU
    h = jnp.dot(z, w1_ref[...],
                preferred_element_type=jnp.float32)           # (TB, 512) f32 acc
    h = jnp.maximum(h + b1_ref[...], 0.0)                     # bias + ReLU in f32 (VPU)
    y = jnp.dot(h.astype(jnp.bfloat16), w2_ref[...],
                preferred_element_type=jnp.float32)           # (TB, 896) f32 acc
    o_ref[...] = jax.nn.sigmoid(y + b2_ref[...])              # sigmoid (EUP), lane-dense store


def _round_up(x, m):
    return (x + m - 1) // m * m


@functools.partial(jax.jit, static_argnames=("max_block_b",))
def decoder_forward(z, w1_bf16, b1, w2_bf16, b2, *, max_block_b=512):
    """z: (B, hidden_dims) f32 -> (B, 1, 28, 28) f32.

    w1_bf16: (H, 512) bf16, b1: (1, 512) f32,
    w2_bf16: (512, 896) bf16 (cols 784..895 zero), b2: (1, 896) f32 (cols 784..895 zero).
    """
    B, H = z.shape

    # Batch tile: multiple of 8 (f32 sublane tile); capped so the double-buffered z/out tiles
    # stay small even on v7x's 64 MiB VMEM.
    tb = min(max_block_b, _round_up(B, 8))
    b_pad = _round_up(B, tb)
    if b_pad != B:
        z = jnp.pad(z, ((0, b_pad - B), (0, 0)))
    grid = (pl.cdiv(b_pad, tb),)

    out_padded = pl.pallas_call(
        decoder_kernel,
        out_shape=jax.ShapeDtypeStruct((b_pad, OUT_DIM_PAD), jnp.float32),
        grid=grid,
        in_specs=[
            # z: tiled over the batch grid axis (H equals the full array dim -> legal block).
            pl.BlockSpec((tb, H), lambda i: (i, 0)),
            # Weights / biases: constant index_map -> fetched once, resident across all steps.
            pl.BlockSpec((H, HIDDEN_L1), lambda i: (0, 0)),
            pl.BlockSpec((1, HIDDEN_L1), lambda i: (0, 0)),
            pl.BlockSpec((HIDDEN_L1, OUT_DIM_PAD), lambda i: (0, 0)),
            pl.BlockSpec((1, OUT_DIM_PAD), lambda i: (0, 0)),
        ],
        out_specs=pl.BlockSpec((tb, OUT_DIM_PAD), lambda i: (i, 0)),
        compiler_params=pltpu.CompilerParams(
            dimension_semantics=("parallel",),   # megacore sharding on v7x; no-op on v5e/v6e
        ),
    )(z, w1_bf16, b1, w2_bf16, b2)

    # Drop batch padding and the zero-padded output columns, then match PyTorch's reshape.
    # TODO(synk): if the consumer accepts a flat (B, 784) layout, skip this lane-sparse reshape.
    return out_padded[:B, :OUT_DIM].reshape(-1, 1, 28, 28)


def init_params(key, hidden_dims):
    """Deterministic synthetic init, same shapes/semantics as the PyTorch module (f32)."""
    k1, k2, k3, k4 = jax.random.split(key, 4)
    # nn.Linear(hidden_dims, 512): weight (512, H) -> stored transposed as (H, 512)
    bound1 = 1.0 / jnp.sqrt(hidden_dims)
    w1 = jax.random.uniform(k1, (hidden_dims, HIDDEN_L1), jnp.float32, -bound1, bound1)
    b1 = jax.random.uniform(k2, (1, HIDDEN_L1), jnp.float32, -bound1, bound1)
    # nn.Linear(512, 784): weight (784, 512) -> stored transposed as (512, 784)
    bound2 = 1.0 / jnp.sqrt(float(HIDDEN_L1))
    w2 = jax.random.uniform(k3, (HIDDEN_L1, OUT_DIM), jnp.float32, -bound2, bound2)
    b2 = jax.random.uniform(k4, (1, OUT_DIM), jnp.float32, -bound2, bound2)
    return w1, b1, w2, b2


def prepare_params(w1, b1, w2, b2):
    """Kernel-side layout: bf16 weights, 896-wide (zero-padded) second layer."""
    w1_bf16 = w1.astype(jnp.bfloat16)
    w2_pad = jnp.pad(w2, ((0, 0), (0, OUT_DIM_PAD - OUT_DIM)))        # zero cols 784..895
    b2_pad = jnp.pad(b2, ((0, 0), (0, OUT_DIM_PAD - OUT_DIM)))
    return w1_bf16, b1, w2_pad.astype(jnp.bfloat16), b2_pad


if __name__ == "__main__":
    key = jax.random.PRNGKey(0)
    kz, kp = jax.random.split(key)

    batch = 2
    hidden_dims = 32

    z = jax.random.normal(kz, (batch, hidden_dims), dtype=jnp.float32)
    w1, b1, w2, b2 = init_params(kp, hidden_dims)
    w1_k, b1_k, w2_k, b2_k = prepare_params(w1, b1, w2, b2)

    out = decoder_forward(z, w1_k, b1_k, w2_k, b2_k)
    out = jax.block_until_ready(out)

    # Reference 1: same bf16-weight computation in pure JAX (tight tolerance).
    h_ref = jnp.maximum(
        jnp.dot(z.astype(jnp.bfloat16), w1_k, preferred_element_type=jnp.float32) + b1, 0.0)
    y_ref = jnp.dot(h_ref.astype(jnp.bfloat16), w2_k[:, :OUT_DIM],
                    preferred_element_type=jnp.float32) + b2
    ref_bf16 = jax.nn.sigmoid(y_ref).reshape(-1, 1, 28, 28)

    # Reference 2: full-f32 module semantics (loose tolerance; bounds bf16 quantization error).
    ref_f32 = jax.nn.sigmoid(
        jnp.dot(jnp.maximum(jnp.dot(z, w1) + b1, 0.0), w2) + b2
    ).reshape(-1, 1, 28, 28)

    assert out.shape == (batch, 1, 28, 28)
    assert out.dtype == jnp.float32
    assert jnp.allclose(out, ref_bf16, atol=1e-4, rtol=1e-4)
    assert jnp.allclose(out, ref_f32, atol=1e-2, rtol=1e-2)

    print("KERNEL_OK")
</pallas_src>

<mosaic_0001>
module attributes {stable_mosaic.version = 11 : i64} {
  func.func @decoder_kernel(%arg0: i32, %arg1: memref<8x32xf32, #tpu.memory_space<vmem>>, %arg2: memref<32x512xbf16, #tpu.memory_space<vmem>>, %arg3: memref<1x512xf32, #tpu.memory_space<vmem>>, %arg4: memref<512x896xbf16, #tpu.memory_space<vmem>>, %arg5: memref<1x896xf32, #tpu.memory_space<vmem>>, %arg6: memref<8x896xf32, #tpu.memory_space<vmem>>) attributes {dimension_semantics = [#tpu.dimension_semantics<parallel>], iteration_bounds = array<i64: 1>, scalar_prefetch = 0 : i64, scratch_operands = 0 : i64, tpu.core_type = #tpu.core_type<tc>, window_params = [{transform_indices = @transform_0, window_bounds = array<i64: 8, 32>}, {pipeline_mode = #tpu.pipeline_mode<synchronous>, transform_indices = @transform_1, window_bounds = array<i64: 32, 512>}, {pipeline_mode = #tpu.pipeline_mode<synchronous>, transform_indices = @transform_2, window_bounds = array<i64: 1, 512>}, {pipeline_mode = #tpu.pipeline_mode<synchronous>, transform_indices = @transform_3, window_bounds = array<i64: 512, 896>}, {pipeline_mode = #tpu.pipeline_mode<synchronous>, transform_indices = @transform_4, window_bounds = array<i64: 1, 896>}, {transform_indices = @transform_5, window_bounds = array<i64: 8, 896>}]} {
    %c0 = arith.constant 0 : index
    %c0_0 = arith.constant 0 : index
    %0 = vector.load %arg1[%c0, %c0_0] : memref<8x32xf32, #tpu.memory_space<vmem>>, vector<8x32xf32>
    %1 = arith.truncf %0 : vector<8x32xf32> to vector<8x32xbf16>
    %c0_1 = arith.constant 0 : index
    %c0_2 = arith.constant 0 : index
    %2 = vector.load %arg2[%c0_1, %c0_2] : memref<32x512xbf16, #tpu.memory_space<vmem>>, vector<32x512xbf16>
    %cst = arith.constant dense<0.000000e+00> : vector<8x512xf32>
    %3 = tpu.matmul %1, %2, %cst {dimension_numbers = #tpu.dot_dimension_numbers<[1], [0], [0], [1], [0, 0, 1, 1], [], []>} : vector<8x32xbf16>, vector<32x512xbf16>, vector<8x512xf32> -> vector<8x512xf32>
    %c0_3 = arith.constant 0 : index
    %c0_4 = arith.constant 0 : index
    %4 = vector.load %arg3[%c0_3, %c0_4] : memref<1x512xf32, #tpu.memory_space<vmem>>, vector<1x512xf32>
    %5 = vector.broadcast %4 : vector<1x512xf32> to vector<8x512xf32>
    %6 = arith.addf %3, %5 : vector<8x512xf32>
    %cst_5 = arith.constant 0.000000e+00 : f32
    %7 = vector.broadcast %cst_5 : f32 to vector<8x512xf32>
    %8 = arith.maximumf %6, %7 : vector<8x512xf32>
    %9 = arith.truncf %8 : vector<8x512xf32> to vector<8x512xbf16>
    %c0_6 = arith.constant 0 : index
    %c0_7 = arith.constant 0 : index
    %10 = vector.load %arg4[%c0_6, %c0_7] : memref<512x896xbf16, #tpu.memory_space<vmem>>, vector<512x896xbf16>
    %cst_8 = arith.constant dense<0.000000e+00> : vector<8x896xf32>
    %11 = tpu.matmul %9, %10, %cst_8 {dimension_numbers = #tpu.dot_dimension_numbers<[1], [0], [0], [1], [0, 0, 1, 1], [], []>} : vector<8x512xbf16>, vector<512x896xbf16>, vector<8x896xf32> -> vector<8x896xf32>
    %c0_9 = arith.constant 0 : index
    %c0_10 = arith.constant 0 : index
    %12 = vector.load %arg5[%c0_9, %c0_10] : memref<1x896xf32, #tpu.memory_space<vmem>>, vector<1x896xf32>
    %13 = vector.broadcast %12 : vector<1x896xf32> to vector<8x896xf32>
    %14 = arith.addf %11, %13 : vector<8x896xf32>
    %15 = arith.negf %14 : vector<8x896xf32>
    %16 = math.exp %15 : vector<8x896xf32>
    %cst_11 = arith.constant 1.000000e+00 : f32
    %17 = vector.broadcast %cst_11 : f32 to vector<8x896xf32>
    %18 = arith.addf %17, %16 : vector<8x896xf32>
    %19 = arith.divf %17, %18 : vector<8x896xf32>
    %c0_12 = arith.constant 0 : index
    %c0_13 = arith.constant 0 : index
    %20 = vector.load %arg6[%c0_12, %c0_13] : memref<8x896xf32, #tpu.memory_space<vmem>>, vector<8x896xf32>
    tpu.vector_store %arg6[%c0_12, %c0_13], %19 {strides = array<i32>} : memref<8x896xf32, #tpu.memory_space<vmem>>, vector<8x896xf32>,
    return
  }
  func.func @transform_0(%arg0: i32) -> (i32, i32) {
    %c0_i32 = arith.constant 0 : i32
    %c0_i32_0 = arith.constant 0 : i32
    return %arg0, %c0_i32 : i32, i32
  }
  func.func @transform_1(%arg0: i32) -> (i32, i32) {
    %c0_i32 = arith.constant 0 : i32
    %c0_i32_0 = arith.constant 0 : i32
    %c0_i32_1 = arith.constant 0 : i32
    return %c0_i32, %c0_i32_0 : i32, i32
  }
  func.func @transform_2(%arg0: i32) -> (i32, i32) {
    %c0_i32 = arith.constant 0 : i32
    %c0_i32_0 = arith.constant 0 : i32
    %c0_i32_1 = arith.constant 0 : i32
    return %c0_i32, %c0_i32_0 : i32, i32
  }
  func.func @transform_3(%arg0: i32) -> (i32, i32) {
    %c0_i32 = arith.constant 0 : i32
    %c0_i32_0 = arith.constant 0 : i32
    %c0_i32_1 = arith.constant 0 : i32
    return %c0_i32, %c0_i32_0 : i32, i32
  }
  func.func @transform_4(%arg0: i32) -> (i32, i32) {
    %c0_i32 = arith.constant 0 : i32
    %c0_i32_0 = arith.constant 0 : i32
    %c0_i32_1 = arith.constant 0 : i32
    return %c0_i32, %c0_i32_0 : i32, i32
  }
  func.func @transform_5(%arg0: i32) -> (i32, i32) {
    %c0_i32 = arith.constant 0 : i32
    %c0_i32_0 = arith.constant 0 : i32
    return %arg0, %c0_i32 : i32, i32
  }
}

</mosaic_0001>

<bundles_post_ra>
// kernel: decoder_forward.1
= control target key start
LH: loop header
LB: loop body
LE: loop exit
PB: predicated region body
PF: predicated region fallthrough
CT: control target
= control target key end

     0   :  { %10 = vsyncpa [#allocation3], 0  ;;  %s3489_s0 = inlined_call_operand.vmem [shape: f32[8,32], index: 0, kind: input, shape index: {}]   ;;  %s3490_s1 = inlined_call_operand.hbm [shape: bf16[32,512], index: 1, kind: input, shape index: {}]   ;;  %s3491_s2 = inlined_call_operand.vmem [shape: f32[1,512], index: 2, kind: input, shape index: {}]   ;;  %s3492_s3 = inlined_call_operand.hbm [shape: bf16[512,896], index: 3, kind: input, shape index: {}]   ;;  %s3493_s4 = inlined_call_operand.vmem [shape: f32[1,896], index: 4, kind: input, shape index: {}]   ;;  %s3494_s5 = inlined_call_operand.vmem [shape: f32[8,896], index: 5, kind: output, shape index: {}]  }
   0x1   :  { %s18_s20 = sshll.u32 %s3490_s1, 4  ;;  %s19_s20 = int_to_ptr.hbm [resolvable:$true] %s18_s20 }
   0x2   :  { %11 = vsyncpa [#allocation5], 0  ;;  %s3368_s21 = smov [#allocation2]   ;;  %s33_s25 = sshll.u32 %s3492_s3, 4  ;;  %s34_s25 = int_to_ptr.hbm [resolvable:$true] %s33_s25 }
   0x3   :  { %s20_s22 = sshll.u32 %s3368_s21, 4  ;;  %s3369_s26 = smov 256   ;;  %s21_s22 = int_to_ptr.vmem [resolvable:$true] %s20_s22 }
   0x4   :  { %s3370_s27 = smov 16   ;;  %s3371_s28 = smov [#allocation4]  }
   0x5   :  { %26 = dma.hbm_to_vmem [thread:$0]  %s19_s20, 1024, %s21_s22, [#allocation3], %s3369_s26, %s3369_s26, %s3370_s27  }
   0x6   :  { %s35_s29 = sshll.u32 %s3371_s28, 4  ;;  %s3372_s30 = smov 448   ;;  %s36_s29 = int_to_ptr.vmem [resolvable:$true] %s35_s29 }
   0x7   :  { %s3373_s6 = smov 28  }
   0x8   :  { %41 = dma.hbm_to_vmem [thread:$0]  %s34_s25, 28672, %s36_s29, [#allocation5], %s3372_s30, %s3372_s30, %s3373_s6  }
   0x9   :  { %3364 = dma.done.wait [#allocation3], 1024  }
   0xa   :  { %3365 = vsyncadd [#allocation3], 4294966272 }
   0xb   :  { %3366 = dma.done.wait [#allocation5], 28672  }
   0xc   :  { %3367 = vsyncadd [#allocation5], 4294938624  ;;  %v2129_v0 = vld [vmem:[#allocation2 + $0x20] sm:$0xf]  ;;  %v3056_v1 = vld [vmem:[#allocation2 + $0x2c] sm:$0xf0] }
   0xd   :  { %v3054_v2 = vld [vmem:[#allocation2 + $0x24] sm:$0xf]  ;;  %v2130_v3 = vor.u32 %v3056_v1, %v2129_v0  ;;  %v2131_v4 = vld [vmem:[#allocation2 + $0x30] sm:$0xf0]  ;;  %v2137_v5 = vld [vmem:[#allocation2 + $0x28] sm:$0xf] }
   0xe   :  { %v3057_v6 = vld [vmem:[#allocation2 + $0x34] sm:$0xf0]  ;;  %v2134_v7 = vor.u32 %v3054_v2, %v2131_v4  ;;  %v3055_v9 = vld [vmem:[#allocation2 + $0x2c] sm:$0xf]  ;;  %v2139_v10 = vld [vmem:[#allocation2 + $0x38] sm:$0xf0] }
   0xf   :  { %v2138_v8 = vor.u32 %v3057_v6, %v2137_v5  ;;  %v2113_v11 = vld [vmem:[#allocation2] sm:$0xf]  ;;  %123 = vmatpush.bf16.msra.mxu0 %v2130_v3  ;;  %v2142_v12 = vor.u32 %v3055_v9, %v2139_v10  ;;  %v3052_v13 = vld [vmem:[#allocation2 + $0xc] sm:$0xf0]  ;;  %v3050_v14 = vld [vmem:[#allocation2 + $0x4] sm:$0xf] }
  0x10   :  { %v2115_v15 = vld [vmem:[#allocation2 + $0x10] sm:$0xf0]  ;;  %136 = vmatpush.bf16.msra.mxu1 %v2134_v7  ;;  %v2114_v16 = vor.u32 %v3052_v13, %v2113_v11  ;;  %v2121_v18 = vld [vmem:[#allocation2 + $0x8] sm:$0xf]  ;;  %v3053_v19 = vld [vmem:[#allocation2 + $0x14] sm:$0xf0] }
  0x11   :  { %149 = vmatpush.bf16.msra.mxu2 %v2138_v8  ;;  %v2118_v17 = vor.u32 %v3050_v14, %v2115_v15  ;;  %v3051_v20 = vld [vmem:[#allocation2 + $0xc] sm:$0xf]  ;;  %162 = vmatpush.bf16.msra.mxu3 %v2142_v12  ;;  %v2122_v21 = vor.u32 %v3053_v19, %v2121_v18  ;;  %v2123_v22 = vld [vmem:[#allocation2 + $0x18] sm:$0xf0]  ;;  %v53_v23 = vld [vmem:[%s3489_s0] sm:$0xff]  ;;  %vm113_vm0 = vcmask 261120  }
  0x12   :  { %v2345_v24 = vld [vmem:[#allocation4 + $0x188] sm:$0xf]  ;;  %v2126_v25 = vor.u32 %v3051_v20, %v2123_v22  ;;  %v54_v26 = vpack.c.bf16 %v53_v23, %v53_v23  ;;  %v3110_v27 = vld [vmem:[#allocation4 + $0x1a0] sm:$0xf0]  ;;  %v2317_v32 = vld [vmem:[#allocation4 + $0x150] sm:$0xf] }
  0x13   :  { %v2569_v28 = vld [vmem:[#allocation4 + $0x348] sm:$0xf]  ;;  %v3166_v29 = vld [vmem:[#allocation4 + $0x360] sm:$0xf0]  ;;  %124 = vmatpush.bf16.msra.mxu0 %v2114_v16  ;;  %v2346_v30 = vor.u32 %v3110_v27, %v2345_v24  ;;  %v3103_v33 = vld [vmem:[#allocation4 + $0x168] sm:$0xf0] }
  0x14   :  { %v2570_v31 = vor.u32 %v3166_v29, %v2569_v28  ;;  %v2541_v34 = vld [vmem:[#allocation4 + $0x310] sm:$0xf]  ;;  %137 = vmatpush.bf16.msra.mxu1 %v2118_v17  ;;  %v3159_v35 = vld [vmem:[#allocation4 + $0x328] sm:$0xf0]  ;;  %v2793_v36 = vld [vmem:[#allocation4 + $0x508] sm:$0xf]  ;;  %v2318_v38 = vor.u32 %v3103_v33, %v2317_v32 }
  0x15   :  { %150 = vmatpush.bf16.msra.mxu2 %v2122_v21  ;;  %v3222_v37 = vld [vmem:[#allocation4 + $0x520] sm:$0xf0]  ;;  %163 = vmatpush.bf16.msra.mxu3 %v2126_v25  ;;  %v3017_v40 = vld [vmem:[#allocation4 + $0x6c8] sm:$0xf]  ;;  %v2289_v42 = vld [vmem:[#allocation4 + $0x118] sm:$0xf]  ;;  %v2542_v43 = vor.u32 %v3159_v35, %v2541_v34 }
  0x16   :  { %v2794_v39 = vor.u32 %v3222_v37, %v2793_v36  ;;  %v3278_v41 = vld [vmem:[#allocation4 + $0x6e0] sm:$0xf0]  ;;  %2143 = vmatmul.msk.bf16.vlgmr.msra.gmra.mxu0 %vm113_vm0, %v54_v26  ;;  %v3096_v45 = vld [vmem:[#allocation4 + $0x130] sm:$0xf0]  ;;  %v2513_v46 = vld [vmem:[#allocation4 + $0x2d8] sm:$0xf] }
  0x17   :  { %1601 = vmatpush.bf16.msrb.mxu0 %v2346_v30  ;;  %v3018_v44 = vor.u32 %v3278_v41, %v3017_v40  ;;  %v3152_v47 = vld [vmem:[#allocation4 + $0x2f0] sm:$0xf0]  ;;  %2144 = vmatmul.msk.bf16.vlgmr.msra.gmra.mxu1 %vm113_vm0, %v54_v26  ;;  %v2765_v48 = vld [vmem:[#allocation4 + $0x4d0] sm:$0xf]  ;;  %v3215_v49 = vld [vmem:[#allocation4 + $0x4e8] sm:$0xf0]  ;;  %v2290_v53 = vor.u32 %v3096_v45, %v2289_v42 }
  0x18   :  { %1614 = vmatpush.bf16.msrb.mxu1 %v2570_v31  ;;  %2145 = vmatmul.msk.bf16.vlgmr.msra.gmra.mxu2 %vm113_vm0, %v54_v26  ;;  %v2989_v50 = vld [vmem:[#allocation4 + $0x690] sm:$0xf]  ;;  %v2766_v51 = vor.u32 %v3215_v49, %v2765_v48  ;;  %v3271_v52 = vld [vmem:[#allocation4 + $0x6a8] sm:$0xf0]  ;;  %v2261_v55 = vld [vmem:[#allocation4 + $0xe0] sm:$0xf]  ;;  %v2514_v58 = vor.u32 %v3152_v47, %v2513_v46 }
  0x19   :  { %2146 = vmatmul.msk.bf16.vlgmr.msra.gmra.mxu3 %vm113_vm0, %v54_v26  ;;  %1627 = vmatpush.bf16.msrb.mxu2 %v2794_v39  ;;  %v2990_v54 = vor.u32 %v3271_v52, %v2989_v50  ;;  %v3089_v56 = vld [vmem:[#allocation4 + $0xf8] sm:$0xf0]  ;;  %v2737_v57 = vld [vmem:[#allocation4 + $0x498] sm:$0xf]  ;;  %v3208_v59 = vld [vmem:[#allocation4 + $0x4b0] sm:$0xf0] }
  0x1a   :  { %1640 = vmatpush.bf16.msrb.mxu3 %v3018_v44  ;;  %v2961_v60 = vld [vmem:[#allocation4 + $0x658] sm:$0xf]  ;;  %v3264_v61 = vld [vmem:[#allocation4 + $0x670] sm:$0xf0]  ;;  %v2485_v62 = vld [vmem:[#allocation4 + $0x2a0] sm:$0xf]  ;;  %v2738_v0 = vor.u32 %v3208_v59, %v2737_v57  ;;  %v2262_v1 = vor.u32 %v3089_v56, %v2261_v55 }
  0x1b   :  { %1602 = vmatpush.bf16.msrb.mxu0 %v2318_v38  ;;  %v3145_v63 = vld [vmem:[#allocation4 + $0x2b8] sm:$0xf0]  ;;  %v2962_v2 = vor.u32 %v3264_v61, %v2961_v60  ;;  %v2233_v3 = vld [vmem:[#allocation4 + $0xa8] sm:$0xf]  ;;  %v2709_v4 = vld [vmem:[#allocation4 + $0x460] sm:$0xf] }
  0x1c   :  { %1615 = vmatpush.bf16.msrb.mxu1 %v2542_v43  ;;  %v3201_v5 = vld [vmem:[#allocation4 + $0x478] sm:$0xf0]  ;;  %v2486_v6 = vor.u32 %v3145_v63, %v2485_v62  ;;  %v3082_v7 = vld [vmem:[#allocation4 + $0xc0] sm:$0xf0]  ;;  %v2933_v8 = vld [vmem:[#allocation4 + $0x620] sm:$0xf] }
  0x1d   :  { %1628 = vmatpush.bf16.msrb.mxu2 %v2766_v51  ;;  %v3257_v9 = vld [vmem:[#allocation4 + $0x638] sm:$0xf0]  ;;  %v2457_v10 = vld [vmem:[#allocation4 + $0x268] sm:$0xf]  ;;  %v3138_v11 = vld [vmem:[#allocation4 + $0x280] sm:$0xf0]  ;;  %v2710_v12 = vor.u32 %v3201_v5, %v2709_v4  ;;  %v2234_v13 = vor.u32 %v3082_v7, %v2233_v3 }
  0x1e   :  { %1641 = vmatpush.bf16.msrb.mxu3 %v2990_v54  ;;  %v2934_v14 = vor.u32 %v3257_v9, %v2933_v8  ;;  %v2205_v15 = vld [vmem:[#allocation4 + $0x70] sm:$0xf]  ;;  %v2681_v16 = vld [vmem:[#allocation4 + $0x428] sm:$0xf]  ;;  %v3194_v17 = vld [vmem:[#allocation4 + $0x440] sm:$0xf0]  ;;  %v2458_v18 = vor.u32 %v3138_v11, %v2457_v10 }
  0x1f   :  { %1603 = vmatpush.bf16.msrb.mxu0 %v2290_v53  ;;  %v3075_v19 = vld [vmem:[#allocation4 + $0x88] sm:$0xf0]  ;;  %v2905_v20 = vld [vmem:[#allocation4 + $0x5e8] sm:$0xf]  ;;  %v3250_v21 = vld [vmem:[#allocation4 + $0x600] sm:$0xf0]  ;;  %v2682_v24 = vor.u32 %v3194_v17, %v2681_v16 }
  0x20   :  { %1616 = vmatpush.bf16.msrb.mxu1 %v2514_v58  ;;  %v2429_v22 = vld [vmem:[#allocation4 + $0x230] sm:$0xf]  ;;  %v3131_v23 = vld [vmem:[#allocation4 + $0x248] sm:$0xf0]  ;;  %v2206_v25 = vor.u32 %v3075_v19, %v2205_v15  ;;  %v2906_v26 = vor.u32 %v3250_v21, %v2905_v20  ;;  %v2177_v27 = vld [vmem:[#allocation4 + $0x38] sm:$0xf] }
  0x21   :  { %1629 = vmatpush.bf16.msrb.mxu2 %v2738_v0  ;;  %v2653_v28 = vld [vmem:[#allocation4 + $0x3f0] sm:$0xf]  ;;  %v3187_v29 = vld [vmem:[#allocation4 + $0x408] sm:$0xf0]  ;;  %v2430_v30 = vor.u32 %v3131_v23, %v2429_v22  ;;  %v3068_v31 = vld [vmem:[#allocation4 + $0x50] sm:$0xf0] }
  0x22   :  { %1642 = vmatpush.bf16.msrb.mxu3 %v2962_v2  ;;  %v2877_v32 = vld [vmem:[#allocation4 + $0x5b0] sm:$0xf]  ;;  %v3243_v33 = vld [vmem:[#allocation4 + $0x5c8] sm:$0xf0]  ;;  %v2401_v34 = vld [vmem:[#allocation4 + $0x1f8] sm:$0xf]  ;;  %v2654_v36 = vor.u32 %v3187_v29, %v2653_v28  ;;  %v2178_v38 = vor.u32 %v3068_v31, %v2177_v27 }
  0x23   :  { %1604 = vmatpush.bf16.msrb.mxu0 %v2262_v1  ;;  %v3124_v35 = vld [vmem:[#allocation4 + $0x210] sm:$0xf0]  ;;  %v2149_v37 = vld [vmem:[#allocation4] sm:$0xf]  ;;  %v2878_v39 = vor.u32 %v3243_v33, %v2877_v32  ;;  %v3061_v40 = vld [vmem:[#allocation4 + $0x18] sm:$0xf0] }
  0x24   :  { %1617 = vmatpush.bf16.msrb.mxu1 %v2486_v6  ;;  %v2625_v41 = vld [vmem:[#allocation4 + $0x3b8] sm:$0xf]  ;;  %v3180_v42 = vld [vmem:[#allocation4 + $0x3d0] sm:$0xf0]  ;;  %v2402_v43 = vor.u32 %v3124_v35, %v2401_v34  ;;  %v2373_v44 = vld [vmem:[#allocation4 + $0x1c0] sm:$0xf]  ;;  %v2150_v53 = vor.u32 %v3061_v40, %v2149_v37 }
  0x25   :  { %1630 = vmatpush.bf16.msrb.mxu2 %v2710_v12  ;;  %v2849_v45 = vld [vmem:[#allocation4 + $0x578] sm:$0xf]  ;;  %v3236_v46 = vld [vmem:[#allocation4 + $0x590] sm:$0xf0]  ;;  %v3117_v47 = vld [vmem:[#allocation4 + $0x1d8] sm:$0xf0]  ;;  %v2626_v52 = vor.u32 %v3180_v42, %v2625_v41 }
  0x26   :  { %1643 = vmatpush.bf16.msrb.mxu3 %v2934_v14  ;;  %v3107_v48 = vld [vmem:[#allocation4 + $0x18c] sm:$0xf]  ;;  %v2347_v49 = vld [vmem:[#allocation4 + $0x1a4] sm:$0xf0]  ;;  %v2850_v54 = vor.u32 %v3236_v46, %v2849_v45  ;;  %v3100_v55 = vld [vmem:[#allocation4 + $0x154] sm:$0xf]  ;;  %v2374_v59 = vor.u32 %v3117_v47, %v2373_v44 }
  0x27   :  { %1605 = vmatpush.bf16.msrb.mxu0 %v2234_v13  ;;  %v3163_v50 = vld [vmem:[#allocation4 + $0x34c] sm:$0xf]  ;;  %v2571_v51 = vld [vmem:[#allocation4 + $0x364] sm:$0xf0]  ;;  %v2597_v56 = vld [vmem:[#allocation4 + $0x380] sm:$0xf]  ;;  %v2350_v60 = vor.u32 %v3107_v48, %v2347_v49 }
  0x28   :  { %1618 = vmatpush.bf16.msrb.mxu1 %v2458_v18  ;;  %v3173_v57 = vld [vmem:[#allocation4 + $0x398] sm:$0xf0]  ;;  %v2821_v58 = vld [vmem:[#allocation4 + $0x540] sm:$0xf]  ;;  %v3219_v62 = vld [vmem:[#allocation4 + $0x50c] sm:$0xf]  ;;  %v2574_v0 = vor.u32 %v3163_v50, %v2571_v51 }
  0x29   :  { %1631 = vmatpush.bf16.msrb.mxu2 %v2682_v24  ;;  %v3229_v61 = vld [vmem:[#allocation4 + $0x558] sm:$0xf0]  ;;  %v2795_v63 = vld [vmem:[#allocation4 + $0x524] sm:$0xf0]  ;;  %v2319_v1 = vld [vmem:[#allocation4 + $0x16c] sm:$0xf0]  ;;  %v2598_v6 = vor.u32 %v3173_v57, %v2597_v56 }
  0x2a   :  { %1644 = vmatpush.bf16.msrb.mxu3 %v2906_v26  ;;  %v3275_v2 = vld [vmem:[#allocation4 + $0x6cc] sm:$0xf]  ;;  %v3019_v3 = vld [vmem:[#allocation4 + $0x6e4] sm:$0xf0]  ;;  %v3156_v4 = vld [vmem:[#allocation4 + $0x314] sm:$0xf]  ;;  %v2822_v7 = vor.u32 %v3229_v61, %v2821_v58  ;;  %v2798_v8 = vor.u32 %v3219_v62, %v2795_v63  ;;  %v2322_v9 = vor.u32 %v3100_v55, %v2319_v1 }
  0x2b   :  { %1606 = vmatpush.bf16.msrb.mxu0 %v2206_v25  ;;  %v2543_v5 = vld [vmem:[#allocation4 + $0x32c] sm:$0xf0]  ;;  %v3022_v10 = vor.u32 %v3275_v2, %v3019_v3  ;;  %v3093_v11 = vld [vmem:[#allocation4 + $0x11c] sm:$0xf]  ;;  %v3212_v12 = vld [vmem:[#allocation4 + $0x4d4] sm:$0xf] }
  0x2c   :  { %1619 = vmatpush.bf16.msrb.mxu1 %v2430_v30  ;;  %v2767_v13 = vld [vmem:[#allocation4 + $0x4ec] sm:$0xf0]  ;;  %v2546_v14 = vor.u32 %v3156_v4, %v2543_v5  ;;  %v2291_v15 = vld [vmem:[#allocation4 + $0x134] sm:$0xf0]  ;;  %v3268_v16 = vld [vmem:[#allocation4 + $0x694] sm:$0xf] }
  0x2d   :  { %1632 = vmatpush.bf16.msrb.mxu2 %v2654_v36  ;;  %v2991_v17 = vld [vmem:[#allocation4 + $0x6ac] sm:$0xf0]  ;;  %v3149_v18 = vld [vmem:[#allocation4 + $0x2dc] sm:$0xf]  ;;  %v2515_v19 = vld [vmem:[#allocation4 + $0x2f4] sm:$0xf0]  ;;  %v2770_v20 = vor.u32 %v3212_v12, %v2767_v13  ;;  %v2294_v21 = vor.u32 %v3093_v11, %v2291_v15 }
  0x2e   :  { %1645 = vmatpush.bf16.msrb.mxu3 %v2878_v39  ;;  %v2994_v22 = vor.u32 %v3268_v16, %v2991_v17  ;;  %v3086_v23 = vld [vmem:[#allocation4 + $0xe4] sm:$0xf]  ;;  %v3205_v24 = vld [vmem:[#allocation4 + $0x49c] sm:$0xf]  ;;  %v2739_v25 = vld [vmem:[#allocation4 + $0x4b4] sm:$0xf0]  ;;  %v2518_v26 = vor.u32 %v3149_v18, %v2515_v19 }
  0x2f   :  { %1607 = vmatpush.bf16.msrb.mxu0 %v2178_v38  ;;  %v2263_v27 = vld [vmem:[#allocation4 + $0xfc] sm:$0xf0]  ;;  %v3261_v28 = vld [vmem:[#allocation4 + $0x65c] sm:$0xf]  ;;  %v2963_v29 = vld [vmem:[#allocation4 + $0x674] sm:$0xf0]  ;;  %v2742_v32 = vor.u32 %v3205_v24, %v2739_v25 }
  0x30   :  { %1620 = vmatpush.bf16.msrb.mxu1 %v2402_v43  ;;  %v3142_v30 = vld [vmem:[#allocation4 + $0x2a4] sm:$0xf]  ;;  %v2487_v31 = vld [vmem:[#allocation4 + $0x2bc] sm:$0xf0]  ;;  %v2266_v33 = vor.u32 %v3086_v23, %v2263_v27  ;;  %v2966_v34 = vor.u32 %v3261_v28, %v2963_v29  ;;  %v3079_v35 = vld [vmem:[#allocation4 + $0xac] sm:$0xf] }
  0x31   :  { %1633 = vmatpush.bf16.msrb.mxu2 %v2626_v52  ;;  %v3198_v36 = vld [vmem:[#allocation4 + $0x464] sm:$0xf]  ;;  %v2711_v37 = vld [vmem:[#allocation4 + $0x47c] sm:$0xf0]  ;;  %v2490_v38 = vor.u32 %v3142_v30, %v2487_v31  ;;  %v2235_v39 = vld [vmem:[#allocation4 + $0xc4] sm:$0xf0] }
  0x32   :  { %1646 = vmatpush.bf16.msrb.mxu3 %v2850_v54  ;;  %v3254_v40 = vld [vmem:[#allocation4 + $0x624] sm:$0xf]  ;;  %v2935_v41 = vld [vmem:[#allocation4 + $0x63c] sm:$0xf0]  ;;  %v3135_v42 = vld [vmem:[#allocation4 + $0x26c] sm:$0xf]  ;;  %v2714_v44 = vor.u32 %v3198_v36, %v2711_v37  ;;  %v2238_v45 = vor.u32 %v3079_v35, %v2235_v39 }
  0x33   :  { %1608 = vmatpush.bf16.msrb.mxu0 %v2150_v53  ;;  %v2459_v43 = vld [vmem:[#allocation4 + $0x284] sm:$0xf0]  ;;  %v2938_v46 = vor.u32 %v3254_v40, %v2935_v41  ;;  %v3072_v48 = vld [vmem:[#allocation4 + $0x74] sm:$0xf]  ;;  %v2207_v49 = vld [vmem:[#allocation4 + $0x8c] sm:$0xf0] }
  0x34   :  { %1621 = vmatpush.bf16.msrb.mxu1 %v2374_v59  ;;  %v2462_v47 = vor.u32 %v3135_v42, %v2459_v43  ;;  %v3128_v50 = vld [vmem:[#allocation4 + $0x234] sm:$0xf]  ;;  %v2431_v51 = vld [vmem:[#allocation4 + $0x24c] sm:$0xf0]  ;;  %v2210_v52 = vor.u32 %v3072_v48, %v2207_v49  ;;  %v3191_v54 = vld [vmem:[#allocation4 + $0x42c] sm:$0xf] }
  0x35   :  { %1634 = vmatpush.bf16.msrb.mxu2 %v2598_v6  ;;  %v2434_v53 = vor.u32 %v3128_v50, %v2431_v51  ;;  %v2683_v55 = vld [vmem:[#allocation4 + $0x444] sm:$0xf0]  ;;  %v3247_v56 = vld [vmem:[#allocation4 + $0x5ec] sm:$0xf]  ;;  %v2179_v61 = vld [vmem:[#allocation4 + $0x54] sm:$0xf0] }
  0x36   :  { %1647 = vmatpush.bf16.msrb.mxu3 %v2822_v7  ;;  %v2686_v57 = vor.u32 %v3191_v54, %v2683_v55  ;;  %v2907_v58 = vld [vmem:[#allocation4 + $0x604] sm:$0xf0]  ;;  %v3121_v63 = vld [vmem:[#allocation4 + $0x1fc] sm:$0xf]  ;;  %v3184_v2 = vld [vmem:[#allocation4 + $0x3f4] sm:$0xf] }
  0x37   :  { %1653 = vmatpush.bf16.msra.mxu0 %v2350_v60  ;;  %v2910_v59 = vor.u32 %v3247_v56, %v2907_v58  ;;  %v3065_v60 = vld [vmem:[#allocation4 + $0x3c] sm:$0xf]  ;;  %v2655_v3 = vld [vmem:[#allocation4 + $0x40c] sm:$0xf0]  ;;  %v3240_v4 = vld [vmem:[#allocation4 + $0x5b4] sm:$0xf] }
  0x38   :  { %1666 = vmatpush.bf16.msra.mxu1 %v2574_v0  ;;  %v2182_v62 = vor.u32 %v3065_v60, %v2179_v61  ;;  %v2403_v0 = vld [vmem:[#allocation4 + $0x214] sm:$0xf0]  ;;  %v2658_v5 = vor.u32 %v3184_v2, %v2655_v3  ;;  %v2879_v6 = vld [vmem:[#allocation4 + $0x5cc] sm:$0xf0]  ;;  %v2375_v12 = vld [vmem:[#allocation4 + $0x1dc] sm:$0xf0] }
  0x39   :  { %1679 = vmatpush.bf16.msra.mxu2 %v2798_v8  ;;  %v2406_v1 = vor.u32 %v3121_v63, %v2403_v0  ;;  %v2882_v7 = vor.u32 %v3240_v4, %v2879_v6  ;;  %v3058_v8 = vld [vmem:[#allocation4 + $0x4] sm:$0xf]  ;;  %v2627_v15 = vld [vmem:[#allocation4 + $0x3d4] sm:$0xf0]  ;;  %v3233_v17 = vld [vmem:[#allocation4 + $0x57c] sm:$0xf] }
  0x3a   :  { %1692 = vmatpush.bf16.msra.mxu3 %v3022_v10  ;;  %v3114_v10 = vld [vmem:[#allocation4 + $0x1c4] sm:$0xf]  ;;  %v2851_v18 = vld [vmem:[#allocation4 + $0x594] sm:$0xf0]  ;;  %v2823_v24 = vld [vmem:[#allocation4 + $0x55c] sm:$0xf0] }
  0x3b   :  { %1654 = vmatpush.bf16.msra.mxu0 %v2322_v9  ;;  %v2151_v9 = vld [vmem:[#allocation4 + $0x1c] sm:$0xf0]  ;;  %v2378_v13 = vor.u32 %v3114_v10, %v2375_v12  ;;  %v2854_v19 = vor.u32 %v3233_v17, %v2851_v18  ;;  %v3226_v23 = vld [vmem:[#allocation4 + $0x544] sm:$0xf]  ;;  %v2577_v35 = vld [vmem:[#allocation4 + $0x350] sm:$0xf] }
  0x3c   :  { %1667 = vmatpush.bf16.msra.mxu1 %v2546_v14  ;;  %v2154_v11 = vor.u32 %v3058_v8, %v2151_v9  ;;  %v3177_v14 = vld [vmem:[#allocation4 + $0x3bc] sm:$0xf]  ;;  %v2826_v25 = vor.u32 %v3226_v23, %v2823_v24  ;;  %v3167_v36 = vld [vmem:[#allocation4 + $0x368] sm:$0xf0]  ;;  %v3160_v48 = vld [vmem:[#allocation4 + $0x330] sm:$0xf0] }
  0x3d   :  { %1680 = vmatpush.bf16.msra.mxu2 %v2770_v20  ;;  %v2630_v16 = vor.u32 %v3177_v14, %v2627_v15  ;;  %v3170_v20 = vld [vmem:[#allocation4 + $0x384] sm:$0xf]  ;;  %v2578_v43 = vor.u32 %v3167_v36, %v2577_v35  ;;  %v2801_v54 = vld [vmem:[#allocation4 + $0x510] sm:$0xf]  ;;  %v3223_v55 = vld [vmem:[#allocation4 + $0x528] sm:$0xf0] }
  0x3e   :  { %1693 = vmatpush.bf16.msra.mxu3 %v2994_v22  ;;  %v3025_v56 = vld [vmem:[#allocation4 + $0x6d0] sm:$0xf]  ;;  %v3279_v60 = vld [vmem:[#allocation4 + $0x6e8] sm:$0xf0]  ;;  %v2297_v61 = vld [vmem:[#allocation4 + $0x120] sm:$0xf]  ;;  %v2802_v3 = vor.u32 %v3223_v55, %v2801_v54 }
  0x3f   :  { %1655 = vmatpush.bf16.msra.mxu0 %v2294_v21  ;;  %v2599_v21 = vld [vmem:[#allocation4 + $0x39c] sm:$0xf0]  ;;  %v3216_v8 = vld [vmem:[#allocation4 + $0x4f0] sm:$0xf0]  ;;  %v2997_v9 = vld [vmem:[#allocation4 + $0x698] sm:$0xf] }
  0x40   :  { %1668 = vmatpush.bf16.msra.mxu1 %v2518_v26  ;;  %v2602_v22 = vor.u32 %v3170_v20, %v2599_v21  ;;  %v63_v26 = vld [vmem:[%s3491_s2] sm:$0xf]  ;;  %v3272_v12 = vld [vmem:[#allocation4 + $0x6b0] sm:$0xf0]  ;;  %v3090_v14 = vld [vmem:[#allocation4 + $0x100] sm:$0xf0] }
  0x41   :  { %1681 = vmatpush.bf16.msra.mxu2 %v2742_v32  ;;  %v65_v27 = vperm.slane %v63_v26, 0  ;;  %v66_v28 = vperm.slane %v63_v26, 1  ;;  %v2353_v32 = vld [vmem:[#allocation4 + $0x190] sm:$0xf]  ;;  %v67_v39 = vperm.slane %v63_v26, 2  ;;  %v68_v42 = vperm.slane %v63_v26, 3 }
  0x42   :  { %1694 = vmatpush.bf16.msra.mxu3 %v2966_v34  ;;  %v2521_v0 = vld [vmem:[#allocation4 + $0x2e0] sm:$0xf]  ;;  %v2493_v15 = vld [vmem:[#allocation4 + $0x2a8] sm:$0xf]  ;;  %v2998_v20 = vor.u32 %v3272_v12, %v2997_v9  ;;  %v3209_v23 = vld [vmem:[#allocation4 + $0x4b8] sm:$0xf0] }
  0x43   :  { %1656 = vmatpush.bf16.msra.mxu0 %v2266_v33  ;;  %v3111_v33 = vld [vmem:[#allocation4 + $0x1a8] sm:$0xf0]  ;;  %v3265_v26 = vld [vmem:[#allocation4 + $0x678] sm:$0xf0]  ;;  %v2409_v55 = vld [vmem:[#allocation4 + $0x200] sm:$0xf] }
  0x44   :  { %1669 = vmatpush.bf16.msra.mxu1 %v2490_v38  ;;  %v2354_v40 = vor.u32 %v3111_v33, %v2353_v32  ;;  %v2717_v33 = vld [vmem:[#allocation4 + $0x468] sm:$0xf]  ;;  %v3069_v54 = vld [vmem:[#allocation4 + $0x58] sm:$0xf0]  ;;  %v3164_v9 = vld [vmem:[#allocation4 + $0x354] sm:$0xf] }
  0x45   :  { %1682 = vmatpush.bf16.msra.mxu2 %v2714_v44  ;;  %v2325_v44 = vld [vmem:[#allocation4 + $0x158] sm:$0xf] }
  0x46   :  { %1695 = vmatpush.bf16.msra.mxu3 %v2938_v46 }
  0x47   :  { %1657 = vmatpush.bf16.msra.mxu0 %v2238_v45  ;;  %v3104_v45 = vld [vmem:[#allocation4 + $0x170] sm:$0xf0] }
  0x48   :  { %1670 = vmatpush.bf16.msra.mxu1 %v2462_v47  ;;  %v2549_v47 = vld [vmem:[#allocation4 + $0x318] sm:$0xf] }
  0x49   :  { %1683 = vmatpush.bf16.msra.mxu2 %v2686_v57 }
  0x4a   :  { %1696 = vmatpush.bf16.msra.mxu3 %v2910_v59  ;;  %v2550_v59 = vor.u32 %v3160_v48, %v2549_v47  ;;  %v2689_v47 = vld [vmem:[#allocation4 + $0x430] sm:$0xf]  ;;  %v3195_v48 = vld [vmem:[#allocation4 + $0x448] sm:$0xf0] }
  0x4b   :  { %1658 = vmatpush.bf16.msra.mxu0 %v2210_v52 }
  0x4c   :  { %1671 = vmatpush.bf16.msra.mxu1 %v2434_v53  ;;  %v2326_v53 = vor.u32 %v3104_v45, %v2325_v44 }
  0x4d   :  { %1684 = vmatpush.bf16.msra.mxu2 %v2658_v5  ;;  %v3026_v5 = vor.u32 %v3279_v60, %v3025_v56  ;;  %v3125_v56 = vld [vmem:[#allocation4 + $0x218] sm:$0xf0]  ;;  %v3188_v60 = vld [vmem:[#allocation4 + $0x410] sm:$0xf0] }
  0x4e   :  { %1697 = vmatpush.bf16.msra.mxu3 %v2882_v7  ;;  %v2773_v7 = vld [vmem:[#allocation4 + $0x4d8] sm:$0xf] }
  0x4f   :  { %1659 = vmatpush.bf16.msra.mxu0 %v2182_v62  ;;  %v3097_v62 = vld [vmem:[#allocation4 + $0x138] sm:$0xf0]  ;;  %v2774_v18 = vor.u32 %v3216_v8, %v2773_v7  ;;  %v2355_v8 = vld [vmem:[#allocation4 + $0x1ac] sm:$0xf0] }
  0x50   :  { %1672 = vmatpush.bf16.msra.mxu1 %v2406_v1  ;;  %v3153_v1 = vld [vmem:[#allocation4 + $0x2f8] sm:$0xf0]  ;;  %v2298_v6 = vor.u32 %v3097_v62, %v2297_v61  ;;  %v2885_v61 = vld [vmem:[#allocation4 + $0x5b8] sm:$0xf] }
  0x51   :  { %1685 = vmatpush.bf16.msra.mxu2 %v2630_v16  ;;  %v3146_v16 = vld [vmem:[#allocation4 + $0x2c0] sm:$0xf0] }
  0x52   :  { %1698 = vmatpush.bf16.msra.mxu3 %v2854_v19  ;;  %v2494_v24 = vor.u32 %v3146_v16, %v2493_v15 }
  0x53   :  { %1660 = vmatpush.bf16.msra.mxu0 %v2154_v11  ;;  %v2522_v11 = vor.u32 %v3153_v1, %v2521_v0  ;;  %v3244_v0 = vld [vmem:[#allocation4 + $0x5d0] sm:$0xf0]  ;;  %v2157_v1 = vld [vmem:[#allocation4 + $0x8] sm:$0xf] }
  0x54   :  { %1673 = vmatpush.bf16.msra.mxu1 %v2378_v13  ;;  %v2269_v13 = vld [vmem:[#allocation4 + $0xe8] sm:$0xf]  ;;  %v2886_v12 = vor.u32 %v3244_v0, %v2885_v61  ;;  %v2971_v0 = vld [vmem:[#allocation4 + $0x67c] sm:$0xf0] }
  0x55   :  { %1686 = vmatpush.bf16.msra.mxu2 %v2602_v22  ;;  %v2270_v21 = vor.u32 %v3090_v14, %v2269_v13  ;;  %v2745_v22 = vld [vmem:[#allocation4 + $0x4a0] sm:$0xf]  ;;  %v3181_v14 = vld [vmem:[#allocation4 + $0x3d8] sm:$0xf0] }
  0x56   :  { %1699 = vmatpush.bf16.msra.mxu3 %v2826_v25  ;;  %v2969_v25 = vld [vmem:[#allocation4 + $0x660] sm:$0xf] }
  0x57   :  { %v2970_v32 = vor.u32 %v3265_v26, %v2969_v25  ;;  %v2633_v13 = vld [vmem:[#allocation4 + $0x3c0] sm:$0xf]  ;;  %v2551_v25 = vld [vmem:[#allocation4 + $0x334] sm:$0xf0] }
  0x93   :  { %v126_v29 = vpop.f32.mrf.mxu0 }
  0x94   :  { %v127_v30 = vadd.f32 %v126_v29, %v65_v27  ;;  %v139_v31 = vpop.f32.mrf.mxu1  ;;  %v2241_v27 = vld [vmem:[#allocation4 + $0xb0] sm:$0xf] }
  0x95   :  { %v140_v34 = vadd.f32 %v139_v31, %v66_v28  ;;  %v3083_v28 = vld [vmem:[#allocation4 + $0xc8] sm:$0xf0]  ;;  %v2465_v29 = vld [vmem:[#allocation4 + $0x270] sm:$0xf]  ;;  %v2746_v31 = vor.u32 %v3209_v23, %v2745_v22  ;;  %v2634_v22 = vor.u32 %v3181_v14, %v2633_v13  ;;  %v2327_v23 = vld [vmem:[#allocation4 + $0x174] sm:$0xf0] }
  0x96   :  { %v169_v37 = vmax.f32 %v127_v30, 0.0  ;;  %v3139_v30 = vld [vmem:[#allocation4 + $0x288] sm:$0xf0]  ;;  %v2242_v35 = vor.u32 %v3083_v28, %v2241_v27  ;;  %v2605_v27 = vld [vmem:[#allocation4 + $0x388] sm:$0xf] }
  0x97   :  { %v170_v38 = vmax.f32 %v140_v34, 0.0  ;;  %v3202_v34 = vld [vmem:[#allocation4 + $0x480] sm:$0xf0]  ;;  %v2466_v36 = vor.u32 %v3139_v30, %v2465_v29  ;;  %v2829_v29 = vld [vmem:[#allocation4 + $0x548] sm:$0xf] }
  0x98   :  { %v3420_v41 = vpack.c.bf16 %v169_v37, %v169_v37  ;;  %v2941_v37 = vld [vmem:[#allocation4 + $0x628] sm:$0xf]  ;;  %v2718_v44 = vor.u32 %v3202_v34, %v2717_v33  ;;  %v3174_v28 = vld [vmem:[#allocation4 + $0x3a0] sm:$0xf0]  ;;  %v3255_v13 = vld [vmem:[#allocation4 + $0x62c] sm:$0xf] }
  0x99   :  { %v3422_v46 = vpack.c.bf16 %v170_v38, %v170_v38  ;;  %v3258_v38 = vld [vmem:[#allocation4 + $0x640] sm:$0xf0]  ;;  %v2943_v14 = vld [vmem:[#allocation4 + $0x644] sm:$0xf0] }
  0x9a   :  { %1609 = vmatmul.bf16.vlgmr.msrb.gmra.mxu0 %v3420_v41  ;;  %v2942_v45 = vor.u32 %v3258_v38, %v2941_v37  ;;  %v3230_v30 = vld [vmem:[#allocation4 + $0x560] sm:$0xf0]  ;;  %v2606_v38 = vor.u32 %v3174_v28, %v2605_v27  ;;  %v2187_v28 = vld [vmem:[#allocation4 + $0x5c] sm:$0xf0] }
  0x9b   :  { %v152_v49 = vpop.f32.mrf.mxu2  ;;  %1622 = vmatmul.bf16.vlgmr.msrb.gmra.mxu1 %v3422_v46  ;;  %1705 = vmatpush.bf16.msrb.mxu0 %v2354_v40  ;;  %v128_v52 = vpop.f32.mrf.mxu0  ;;  %v3076_v40 = vld [vmem:[#allocation4 + $0x90] sm:$0xf0]  ;;  %v3094_v37 = vld [vmem:[#allocation4 + $0x124] sm:$0xf] }
  0x9c   :  { %v153_v50 = vadd.f32 %v152_v49, %v67_v39  ;;  %v165_v51 = vpop.f32.mrf.mxu3  ;;  %1718 = vmatpush.bf16.msrb.mxu1 %v2578_v43  ;;  %v141_v58 = vpop.f32.mrf.mxu1  ;;  %v2213_v39 = vld [vmem:[#allocation4 + $0x78] sm:$0xf]  ;;  %v3132_v43 = vld [vmem:[#allocation4 + $0x250] sm:$0xf0]  ;;  %v3251_v52 = vld [vmem:[#allocation4 + $0x608] sm:$0xf0] }
  0x9d   :  { %v166_v57 = vadd.f32 %v165_v51, %v68_v42  ;;  %v2437_v42 = vld [vmem:[#allocation4 + $0x238] sm:$0xf]  ;;  %v2214_v49 = vor.u32 %v3076_v40, %v2213_v39  ;;  %v2913_v51 = vld [vmem:[#allocation4 + $0x5f0] sm:$0xf]  ;;  %v2299_v39 = vld [vmem:[#allocation4 + $0x13c] sm:$0xf0] }
  0x9e   :  { %v171_v63 = vmax.f32 %v153_v50, 0.0  ;;  %v2438_v50 = vor.u32 %v3132_v43, %v2437_v42  ;;  %v2914_v58 = vor.u32 %v3251_v52, %v2913_v51  ;;  %v3150_v40 = vld [vmem:[#allocation4 + $0x2e4] sm:$0xf]  ;;  %v2523_v42 = vld [vmem:[#allocation4 + $0x2fc] sm:$0xf0]  ;;  %v2830_v43 = vor.u32 %v3230_v30, %v2829_v29 }
  0x9f   :  { %v172_v2 = vmax.f32 %v166_v57, 0.0  ;;  %1706 = vmatpush.bf16.msrb.mxu0 %v2326_v53  ;;  %v2185_v53 = vld [vmem:[#allocation4 + $0x40] sm:$0xf]  ;;  %v2690_v57 = vor.u32 %v3195_v48, %v2689_v47  ;;  %v3213_v47 = vld [vmem:[#allocation4 + $0x4dc] sm:$0xf] }
  0xa0   :  { %v3426_v4 = vpack.c.bf16 %v171_v63, %v171_v63  ;;  %1719 = vmatpush.bf16.msrb.mxu1 %v2550_v59  ;;  %v2661_v59 = vld [vmem:[#allocation4 + $0x3f8] sm:$0xf]  ;;  %v2186_v62 = vor.u32 %v3069_v54, %v2185_v53  ;;  %v2410_v63 = vor.u32 %v3125_v56, %v2409_v55  ;;  %v3269_v51 = vld [vmem:[#allocation4 + $0x69c] sm:$0xf]  ;;  %v3087_v53 = vld [vmem:[#allocation4 + $0xec] sm:$0xf] }
  0xa1   :  { %v3428_v10 = vpack.c.bf16 %v172_v2, %v172_v2  ;;  %v3062_v2 = vld [vmem:[#allocation4 + $0x20] sm:$0xf0]  ;;  %v2662_v7 = vor.u32 %v3188_v60, %v2661_v59  ;;  %v2775_v48 = vld [vmem:[#allocation4 + $0x4f4] sm:$0xf0]  ;;  %v2271_v54 = vld [vmem:[#allocation4 + $0x104] sm:$0xf0] }
  0xa2   :  { %1635 = vmatmul.bf16.vlgmr.msrb.gmra.mxu2 %v3426_v4  ;;  %v2158_v15 = vor.u32 %v3062_v2, %v2157_v1  ;;  %v2999_v52 = vld [vmem:[#allocation4 + $0x6b4] sm:$0xf0]  ;;  %v3143_v55 = vld [vmem:[#allocation4 + $0x2ac] sm:$0xf]  ;;  %v2495_v56 = vld [vmem:[#allocation4 + $0x2c4] sm:$0xf0]  ;;  %v2274_v61 = vor.u32 %v3087_v53, %v2271_v54 }
  0xa3   :  { %1648 = vmatmul.bf16.vlgmr.msrb.gmra.mxu3 %v3428_v10  ;;  %1731 = vmatpush.bf16.msrb.mxu2 %v2802_v3  ;;  %v154_v17 = vpop.f32.mrf.mxu2  ;;  %v2381_v3 = vld [vmem:[#allocation4 + $0x1c8] sm:$0xf]  ;;  %v3206_v59 = vld [vmem:[#allocation4 + $0x4a4] sm:$0xf]  ;;  %v2747_v60 = vld [vmem:[#allocation4 + $0x4bc] sm:$0xf0] }
  0xa4   :  { %1744 = vmatpush.bf16.msrb.mxu3 %v3026_v5  ;;  %v167_v19 = vpop.f32.mrf.mxu3  ;;  %1707 = vmatpush.bf16.msrb.mxu0 %v2298_v6  ;;  %v3118_v5 = vld [vmem:[#allocation4 + $0x1e0] sm:$0xf0]  ;;  %v3108_v6 = vld [vmem:[#allocation4 + $0x194] sm:$0xf]  ;;  %v2857_v17 = vld [vmem:[#allocation4 + $0x580] sm:$0xf] }
  0xa5   :  { %1720 = vmatpush.bf16.msrb.mxu1 %v2522_v11  ;;  %v2579_v11 = vld [vmem:[#allocation4 + $0x36c] sm:$0xf0]  ;;  %v2382_v16 = vor.u32 %v3118_v5, %v2381_v3  ;;  %v2358_v19 = vor.u32 %v3108_v6, %v2355_v8  ;;  %v3080_v1 = vld [vmem:[#allocation4 + $0xb4] sm:$0xf]  ;;  %v2750_v6 = vor.u32 %v3206_v59, %v2747_v60  ;;  %v3199_v8 = vld [vmem:[#allocation4 + $0x46c] sm:$0xf] }
  0xa6   :  { %v2243_v2 = vld [vmem:[#allocation4 + $0xcc] sm:$0xf0]  ;;  %v3136_v3 = vld [vmem:[#allocation4 + $0x274] sm:$0xf]  ;;  %v3066_v27 = vld [vmem:[#allocation4 + $0x44] sm:$0xf] }
  0xa7   :  { %1732 = vmatpush.bf16.msrb.mxu2 %v2774_v18  ;;  %v3237_v18 = vld [vmem:[#allocation4 + $0x598] sm:$0xf0]  ;;  %v2467_v5 = vld [vmem:[#allocation4 + $0x28c] sm:$0xf0]  ;;  %v3122_v29 = vld [vmem:[#allocation4 + $0x204] sm:$0xf] }
  0xa8   :  { %1745 = vmatpush.bf16.msrb.mxu3 %v2998_v20  ;;  %1708 = vmatpush.bf16.msrb.mxu0 %v2270_v21  ;;  %v2582_v20 = vor.u32 %v3164_v9, %v2579_v11  ;;  %v3101_v21 = vld [vmem:[#allocation4 + $0x15c] sm:$0xf]  ;;  %v2858_v26 = vor.u32 %v3237_v18, %v2857_v17  ;;  %v2719_v9 = vld [vmem:[#allocation4 + $0x484] sm:$0xf0]  ;;  %v2246_v11 = vor.u32 %v3080_v1, %v2243_v2  ;;  %v2439_v18 = vld [vmem:[#allocation4 + $0x254] sm:$0xf0] }
  0xa9   :  { %1721 = vmatpush.bf16.msrb.mxu1 %v2494_v24  ;;  %v3157_v24 = vld [vmem:[#allocation4 + $0x31c] sm:$0xf]  ;;  %v2330_v33 = vor.u32 %v3101_v21, %v2327_v23  ;;  %v3192_v21 = vld [vmem:[#allocation4 + $0x434] sm:$0xf]  ;;  %v2411_v30 = vld [vmem:[#allocation4 + $0x21c] sm:$0xf0] }
  0xaa   :  { %1661 = vmatmul.bf16.vlgmr.msra.gmra.mxu0 %v3420_v41  ;;  %v2554_v34 = vor.u32 %v3157_v24, %v2551_v25  ;;  %v3129_v17 = vld [vmem:[#allocation4 + $0x23c] sm:$0xf]  ;;  %v3248_v25 = vld [vmem:[#allocation4 + $0x5f4] sm:$0xf]  ;;  %v2333_v59 = vld [vmem:[#allocation4 + $0x160] sm:$0xf] }
  0xab   :  { %1733 = vmatpush.bf16.msrb.mxu2 %v2746_v31  ;;  %1674 = vmatmul.bf16.vlgmr.msra.gmra.mxu1 %v3422_v46  ;;  %v3220_v31 = vld [vmem:[#allocation4 + $0x514] sm:$0xf]  ;;  %v2442_v24 = vor.u32 %v3129_v17, %v2439_v18  ;;  %v3171_v1 = vld [vmem:[#allocation4 + $0x38c] sm:$0xf]  ;;  %v2607_v2 = vld [vmem:[#allocation4 + $0x3a4] sm:$0xf0] }
  0xac   :  { %1746 = vmatpush.bf16.msrb.mxu3 %v2970_v32  ;;  %1709 = vmatpush.bf16.msrb.mxu0 %v2242_v35  ;;  %v2803_v32 = vld [vmem:[#allocation4 + $0x52c] sm:$0xf0]  ;;  %v3276_v35 = vld [vmem:[#allocation4 + $0x6d4] sm:$0xf]  ;;  %v2529_v18 = vld [vmem:[#allocation4 + $0x2e8] sm:$0xf] }
  0xad   :  { %1722 = vmatpush.bf16.msrb.mxu1 %v2466_v36  ;;  %v3027_v36 = vld [vmem:[#allocation4 + $0x6ec] sm:$0xf0] }
  0xaf   :  { %1734 = vmatpush.bf16.msrb.mxu2 %v2718_v44  ;;  %v2806_v44 = vor.u32 %v3220_v31, %v2803_v32 }
  0xb0   :  { %1747 = vmatpush.bf16.msrb.mxu3 %v2942_v45  ;;  %1710 = vmatpush.bf16.msrb.mxu0 %v2214_v49  ;;  %v3030_v45 = vor.u32 %v3276_v35, %v3027_v36  ;;  %v2302_v49 = vor.u32 %v3094_v37, %v2299_v39  ;;  %v3241_v35 = vld [vmem:[#allocation4 + $0x5bc] sm:$0xf]  ;;  %v2190_v36 = vor.u32 %v3066_v27, %v2187_v28  ;;  %v3059_v39 = vld [vmem:[#allocation4 + $0xc] sm:$0xf]  ;;  %v2277_v27 = vld [vmem:[#allocation4 + $0xf0] sm:$0xf] }
  0xb1   :  { %1723 = vmatpush.bf16.msrb.mxu1 %v2438_v50  ;;  %v2526_v50 = vor.u32 %v3150_v40, %v2523_v42  ;;  %v2414_v37 = vor.u32 %v3122_v29, %v2411_v30  ;;  %v2159_v40 = vld [vmem:[#allocation4 + $0x24] sm:$0xf0]  ;;  %v3115_v42 = vld [vmem:[#allocation4 + $0x1cc] sm:$0xf]  ;;  %v2501_v30 = vld [vmem:[#allocation4 + $0x2b0] sm:$0xf] }
  0xb2   :  { %1687 = vmatmul.bf16.vlgmr.msra.gmra.mxu2 %v3426_v4  ;;  %v2162_v53 = vor.u32 %v3059_v39, %v2159_v40  ;;  %v3091_v28 = vld [vmem:[#allocation4 + $0x108] sm:$0xf0]  ;;  %v2249_v39 = vld [vmem:[#allocation4 + $0xb8] sm:$0xf]  ;;  %v3084_v40 = vld [vmem:[#allocation4 + $0xd0] sm:$0xf0] }
  0xb3   :  { %1700 = vmatmul.bf16.vlgmr.msra.gmra.mxu3 %v3428_v10  ;;  %1735 = vmatpush.bf16.msrb.mxu2 %v2690_v57  ;;  %v2778_v57 = vor.u32 %v3213_v47, %v2775_v48  ;;  %v3112_v47 = vld [vmem:[#allocation4 + $0x1b0] sm:$0xf0]  ;;  %v2585_v48 = vld [vmem:[#allocation4 + $0x358] sm:$0xf] }
  0xb4   :  { %1748 = vmatpush.bf16.msrb.mxu3 %v2914_v58  ;;  %1711 = vmatpush.bf16.msrb.mxu0 %v2186_v62  ;;  %v3002_v58 = vor.u32 %v3269_v51, %v2999_v52  ;;  %v2498_v62 = vor.u32 %v3143_v55, %v2495_v56  ;;  %v3178_v51 = vld [vmem:[#allocation4 + $0x3c4] sm:$0xf]  ;;  %v2635_v52 = vld [vmem:[#allocation4 + $0x3dc] sm:$0xf0] }
  0xb5   :  { %1724 = vmatpush.bf16.msrb.mxu1 %v2410_v63  ;;  %v3262_v63 = vld [vmem:[#allocation4 + $0x664] sm:$0xf]  ;;  %v2859_v56 = vld [vmem:[#allocation4 + $0x59c] sm:$0xf0]  ;;  %v2638_v60 = vor.u32 %v3178_v51, %v2635_v52  ;;  %v3259_v51 = vld [vmem:[#allocation4 + $0x648] sm:$0xf0] }
  0xb6   :  { %v3234_v55 = vld [vmem:[#allocation4 + $0x584] sm:$0xf] }
  0xb7   :  { %1736 = vmatpush.bf16.msrb.mxu2 %v2662_v7  ;;  %v2974_v7 = vor.u32 %v3262_v63, %v2971_v0  ;;  %v3161_v63 = vld [vmem:[#allocation4 + $0x338] sm:$0xf0]  ;;  %v2862_v0 = vor.u32 %v3234_v55, %v2859_v56  ;;  %v2445_v56 = vld [vmem:[#allocation4 + $0x240] sm:$0xf] }
  0xb8   :  { %1749 = vmatpush.bf16.msrb.mxu3 %v2886_v12  ;;  %1712 = vmatpush.bf16.msrb.mxu0 %v2158_v15  ;;  %v2470_v12 = vor.u32 %v3136_v3, %v2467_v5  ;;  %v3073_v15 = vld [vmem:[#allocation4 + $0x7c] sm:$0xf]  ;;  %v3227_v3 = vld [vmem:[#allocation4 + $0x54c] sm:$0xf]  ;;  %v2831_v5 = vld [vmem:[#allocation4 + $0x564] sm:$0xf0] }
  0xb9   :  { %1725 = vmatpush.bf16.msrb.mxu1 %v2382_v16  ;;  %v2215_v16 = vld [vmem:[#allocation4 + $0x94] sm:$0xf0] }
  0xba   :  { %v2218_v23 = vor.u32 %v3073_v15, %v2215_v16  ;;  %v3098_v15 = vld [vmem:[#allocation4 + $0x140] sm:$0xf0]  ;;  %v2834_v16 = vor.u32 %v3227_v3, %v2831_v5  ;;  %v2417_v5 = vld [vmem:[#allocation4 + $0x208] sm:$0xf] }
  0xbb   :  { %1737 = vmatpush.bf16.msrb.mxu2 %v2634_v22  ;;  %1713 = vmatmul.bf16.vlgmr.msrb.gmra.mxu0 %v3420_v41  ;;  %v2691_v22 = vld [vmem:[#allocation4 + $0x44c] sm:$0xf0] }
  0xbc   :  { %1757 = vmatpush.bf16.msra.mxu0 %v2358_v19  ;;  %1750 = vmatpush.bf16.msrb.mxu3 %v2858_v26  ;;  %v2722_v19 = vor.u32 %v3199_v8, %v2719_v9  ;;  %v2915_v26 = vld [vmem:[#allocation4 + $0x60c] sm:$0xf0]  ;;  %v2694_v31 = vor.u32 %v3192_v21, %v2691_v22  ;;  %v2781_v21 = vld [vmem:[#allocation4 + $0x4e0] sm:$0xf]  ;;  %v3217_v22 = vld [vmem:[#allocation4 + $0x4f8] sm:$0xf0] }
  0xbd   :  { %1770 = vmatpush.bf16.msra.mxu1 %v2582_v20  ;;  %v2946_v20 = vor.u32 %v3255_v13, %v2943_v14  ;;  %v2918_v32 = vor.u32 %v3248_v25, %v2915_v26  ;;  %v2610_v13 = vor.u32 %v3171_v1, %v2607_v2  ;;  %v2305_v14 = vld [vmem:[#allocation4 + $0x128] sm:$0xf]  ;;  %v3273_v25 = vld [vmem:[#allocation4 + $0x6b8] sm:$0xf0]  ;;  %v2782_v29 = vor.u32 %v3217_v22, %v2781_v21  ;;  %v3070_v2 = vld [vmem:[#allocation4 + $0x60] sm:$0xf0] }
  0xbe   :  { %1726 = vmatmul.bf16.vlgmr.msrb.gmra.mxu1 %v3422_v46  ;;  %v2193_v1 = vld [vmem:[#allocation4 + $0x48] sm:$0xf]  ;;  %v2363_v21 = vld [vmem:[#allocation4 + $0x1b4] sm:$0xf0]  ;;  %v3165_v22 = vld [vmem:[#allocation4 + $0x35c] sm:$0xf] }
  0xbf   :  { %1738 = vmatpush.bf16.msrb.mxu2 %v2606_v38  ;;  %v2887_v38 = vld [vmem:[#allocation4 + $0x5d4] sm:$0xf0] }
  0xc0   :  { %1758 = vmatpush.bf16.msra.mxu0 %v2330_v33  ;;  %1751 = vmatpush.bf16.msrb.mxu3 %v2830_v43  ;;  %v3185_v33 = vld [vmem:[#allocation4 + $0x3fc] sm:$0xf]  ;;  %v2383_v43 = vld [vmem:[#allocation4 + $0x1e4] sm:$0xf0] }
  0xc1   :  { %1771 = vmatpush.bf16.msra.mxu1 %v2554_v34  ;;  %v2663_v34 = vld [vmem:[#allocation4 + $0x414] sm:$0xf0]  ;;  %v2386_v54 = vor.u32 %v3115_v42, %v2383_v43 }
  0xc2   :  { %1739 = vmatmul.bf16.vlgmr.msrb.gmra.mxu2 %v3426_v4  ;;  %v2473_v43 = vld [vmem:[#allocation4 + $0x278] sm:$0xf] }
  0xc3   :  { %1783 = vmatpush.bf16.msra.mxu2 %v2806_v44  ;;  %1752 = vmatmul.bf16.vlgmr.msrb.gmra.mxu3 %v3428_v10  ;;  %v2361_v44 = vld [vmem:[#allocation4 + $0x198] sm:$0xf] }
  0xc4   :  { %1796 = vmatpush.bf16.msra.mxu3 %v3030_v45  ;;  %1759 = vmatpush.bf16.msra.mxu0 %v2302_v49  ;;  %v2666_v45 = vor.u32 %v3185_v33, %v2663_v34  ;;  %v3168_v49 = vld [vmem:[#allocation4 + $0x370] sm:$0xf0]  ;;  %v2753_v33 = vld [vmem:[#allocation4 + $0x4a8] sm:$0xf]  ;;  %v3210_v34 = vld [vmem:[#allocation4 + $0x4c0] sm:$0xf0] }
  0xc5   :  { %1772 = vmatpush.bf16.msra.mxu1 %v2526_v50  ;;  %v2890_v50 = vor.u32 %v3241_v35, %v2887_v38  ;;  %v2278_v35 = vor.u32 %v3091_v28, %v2277_v27  ;;  %v2754_v42 = vor.u32 %v3210_v34, %v2753_v33  ;;  %v2865_v28 = vld [vmem:[#allocation4 + $0x588] sm:$0xf] }
  0xc7   :  { %1784 = vmatpush.bf16.msra.mxu2 %v2778_v57  ;;  %v2362_v57 = vor.u32 %v3112_v47, %v2361_v44  ;;  %v3140_v44 = vld [vmem:[#allocation4 + $0x290] sm:$0xf0]  ;;  %v2725_v47 = vld [vmem:[#allocation4 + $0x470] sm:$0xf] }
  0xc8   :  { %1797 = vmatpush.bf16.msra.mxu3 %v3002_v58  ;;  %1760 = vmatpush.bf16.msra.mxu0 %v2274_v61  ;;  %v2586_v58 = vor.u32 %v3168_v49, %v2585_v48  ;;  %v3105_v61 = vld [vmem:[#allocation4 + $0x178] sm:$0xf0]  ;;  %v3203_v48 = vld [vmem:[#allocation4 + $0x488] sm:$0xf0]  ;;  %v2250_v49 = vor.u32 %v3084_v40, %v2249_v39  ;;  %v2474_v52 = vor.u32 %v3140_v44, %v2473_v43  ;;  %v2613_v39 = vld [vmem:[#allocation4 + $0x390] sm:$0xf] }
  0xc9   :  { %1773 = vmatpush.bf16.msra.mxu1 %v2498_v62  ;;  %v2557_v62 = vld [vmem:[#allocation4 + $0x320] sm:$0xf]  ;;  %v2334_v8 = vor.u32 %v3105_v61, %v2333_v59  ;;  %v2726_v55 = vor.u32 %v3203_v48, %v2725_v47  ;;  %v2697_v59 = vld [vmem:[#allocation4 + $0x438] sm:$0xf]  ;;  %v3175_v40 = vld [vmem:[#allocation4 + $0x3a8] sm:$0xf0] }
  0xca   :  { %v2558_v9 = vor.u32 %v3161_v63, %v2557_v62  ;;  %v2921_v62 = vld [vmem:[#allocation4 + $0x5f8] sm:$0xf]  ;;  %v3252_v63 = vld [vmem:[#allocation4 + $0x610] sm:$0xf0]  ;;  %v3231_v43 = vld [vmem:[#allocation4 + $0x568] sm:$0xf0] }
  0xcb   :  { %1785 = vmatpush.bf16.msra.mxu2 %v2750_v6  ;;  %v2809_v6 = vld [vmem:[#allocation4 + $0x518] sm:$0xf]  ;;  %v3221_v44 = vld [vmem:[#allocation4 + $0x51c] sm:$0xf] }
  0xcc   :  { %1798 = vmatpush.bf16.msra.mxu3 %v2974_v7  ;;  %1761 = vmatpush.bf16.msra.mxu0 %v2246_v11  ;;  %v3224_v7 = vld [vmem:[#allocation4 + $0x530] sm:$0xf0]  ;;  %v3033_v11 = vld [vmem:[#allocation4 + $0x6d8] sm:$0xf]  ;;  %v3277_v48 = vld [vmem:[#allocation4 + $0x6dc] sm:$0xf] }
  0xcd   :  { %1774 = vmatpush.bf16.msra.mxu1 %v2470_v12  ;;  %v3280_v12 = vld [vmem:[#allocation4 + $0x6f0] sm:$0xf0]  ;;  %v2810_v17 = vor.u32 %v3224_v7, %v2809_v6  ;;  %v3126_v6 = vld [vmem:[#allocation4 + $0x220] sm:$0xf0]  ;;  %v2922_v7 = vor.u32 %v3252_v63, %v2921_v62  ;;  %v3007_v63 = vld [vmem:[#allocation4 + $0x6bc] sm:$0xf0] }
  0xce   :  { %v3270_v62 = vld [vmem:[#allocation4 + $0x6a4] sm:$0xf] }
  0xcf   :  { %1786 = vmatpush.bf16.msra.mxu2 %v2722_v19  ;;  %v3154_v19 = vld [vmem:[#allocation4 + $0x300] sm:$0xf0] }
  0xd0   :  { %1799 = vmatpush.bf16.msra.mxu3 %v2946_v20  ;;  %1762 = vmatpush.bf16.msra.mxu0 %v2218_v23  ;;  %v3034_v20 = vor.u32 %v3280_v12, %v3033_v11  ;;  %v2306_v23 = vor.u32 %v3098_v15, %v2305_v14  ;;  %v2530_v26 = vor.u32 %v3154_v19, %v2529_v18  ;;  %v2893_v12 = vld [vmem:[#allocation4 + $0x5c0] sm:$0xf]  ;;  %v2165_v14 = vld [vmem:[#allocation4 + $0x10] sm:$0xf]  ;;  %v3119_v18 = vld [vmem:[#allocation4 + $0x1e8] sm:$0xf0] }
  0xd1   :  { %1775 = vmatpush.bf16.msra.mxu1 %v2442_v24  ;;  %v3005_v24 = vld [vmem:[#allocation4 + $0x6a0] sm:$0xf]  ;;  %v2194_v11 = vor.u32 %v3070_v2, %v2193_v1  ;;  %v2418_v15 = vor.u32 %v3126_v6, %v2417_v5  ;;  %v3088_v1 = vld [vmem:[#allocation4 + $0xf4] sm:$0xf]  ;;  %v2279_v2 = vld [vmem:[#allocation4 + $0x10c] sm:$0xf0] }
  0xd2   :  { %v3144_v5 = vld [vmem:[#allocation4 + $0x2b4] sm:$0xf]  ;;  %v2503_v6 = vld [vmem:[#allocation4 + $0x2cc] sm:$0xf0] }
  0xd3   :  { %1787 = vmatpush.bf16.msra.mxu2 %v2694_v31  ;;  %v3147_v31 = vld [vmem:[#allocation4 + $0x2c8] sm:$0xf0] }
  0xd4   :  { %1800 = vmatpush.bf16.msra.mxu3 %v2918_v32  ;;  %1763 = vmatpush.bf16.msra.mxu0 %v2190_v36  ;;  %v3006_v32 = vor.u32 %v3273_v25, %v3005_v24  ;;  %v2977_v36 = vld [vmem:[#allocation4 + $0x668] sm:$0xf]  ;;  %v2502_v38 = vor.u32 %v3147_v31, %v2501_v30  ;;  %v2587_v24 = vld [vmem:[#allocation4 + $0x374] sm:$0xf0] }
  0xd5   :  { %1776 = vmatpush.bf16.msra.mxu1 %v2414_v37  ;;  %v3266_v37 = vld [vmem:[#allocation4 + $0x680] sm:$0xf0]  ;;  %v2641_v25 = vld [vmem:[#allocation4 + $0x3c8] sm:$0xf]  ;;  %v2590_v33 = vor.u32 %v3165_v22, %v2587_v24  ;;  %v2727_v22 = vld [vmem:[#allocation4 + $0x48c] sm:$0xf0] }
  0xd6   :  { %v3256_v24 = vld [vmem:[#allocation4 + $0x634] sm:$0xf] }
  0xd7   :  { %1788 = vmatpush.bf16.msra.mxu2 %v2666_v45  ;;  %v2978_v45 = vor.u32 %v3266_v37, %v2977_v36  ;;  %v3158_v36 = vld [vmem:[#allocation4 + $0x324] sm:$0xf]  ;;  %v2559_v37 = vld [vmem:[#allocation4 + $0x33c] sm:$0xf0] }
  0xd8   :  { %1801 = vmatpush.bf16.msra.mxu3 %v2890_v50  ;;  %1764 = vmatpush.bf16.msra.mxu0 %v2162_v53  ;;  %v2949_v50 = vld [vmem:[#allocation4 + $0x630] sm:$0xf]  ;;  %v2221_v53 = vld [vmem:[#allocation4 + $0x80] sm:$0xf] }
  0xd9   :  { %1777 = vmatpush.bf16.msra.mxu1 %v2386_v54  ;;  %v3077_v54 = vld [vmem:[#allocation4 + $0x98] sm:$0xf0] }
  0xda   :  { %v2222_v61 = vor.u32 %v3077_v54, %v2221_v53  ;;  %v2307_v53 = vld [vmem:[#allocation4 + $0x144] sm:$0xf0] }
  0xdb   :  { %1789 = vmatpush.bf16.msra.mxu2 %v2638_v60  ;;  %1765 = vmatmul.bf16.vlgmr.msra.gmra.mxu0 %v3420_v41  ;;  %v3196_v60 = vld [vmem:[#allocation4 + $0x450] sm:$0xf0] }
  0xdc   :  { %1809 = vmatpush.bf16.msrb.mxu0 %v2362_v57  ;;  %1802 = vmatpush.bf16.msra.mxu3 %v2862_v0  ;;  %v3133_v57 = vld [vmem:[#allocation4 + $0x258] sm:$0xf0]  ;;  %v2698_v3 = vor.u32 %v3196_v60, %v2697_v59  ;;  %v3214_v59 = vld [vmem:[#allocation4 + $0x4e4] sm:$0xf]  ;;  %v2783_v60 = vld [vmem:[#allocation4 + $0x4fc] sm:$0xf0] }
  0xdd   :  { %1822 = vmatpush.bf16.msrb.mxu1 %v2586_v58  ;;  %v2950_v58 = vor.u32 %v3259_v51, %v2949_v50  ;;  %v2446_v0 = vor.u32 %v3133_v57, %v2445_v56  ;;  %v2562_v50 = vor.u32 %v3158_v36, %v2559_v37  ;;  %v2614_v51 = vor.u32 %v3175_v40, %v2613_v39  ;;  %v3151_v56 = vld [vmem:[#allocation4 + $0x2ec] sm:$0xf]  ;;  %v2531_v57 = vld [vmem:[#allocation4 + $0x304] sm:$0xf0]  ;;  %v3249_v36 = vld [vmem:[#allocation4 + $0x5fc] sm:$0xf] }
  0xde   :  { %1778 = vmatmul.bf16.vlgmr.msra.gmra.mxu1 %v3422_v46  ;;  %v2923_v37 = vld [vmem:[#allocation4 + $0x614] sm:$0xf0]  ;;  %v3067_v39 = vld [vmem:[#allocation4 + $0x4c] sm:$0xf]  ;;  %v2195_v40 = vld [vmem:[#allocation4 + $0x64] sm:$0xf0] }
  0xdf   :  { %1790 = vmatpush.bf16.msra.mxu2 %v2610_v13  ;;  %v3245_v13 = vld [vmem:[#allocation4 + $0x5d8] sm:$0xf0] }
  0xe0   :  { %1810 = vmatpush.bf16.msrb.mxu0 %v2334_v8  ;;  %1803 = vmatpush.bf16.msra.mxu3 %v2834_v16  ;;  %v2669_v8 = vld [vmem:[#allocation4 + $0x400] sm:$0xf]  ;;  %v3063_v16 = vld [vmem:[#allocation4 + $0x28] sm:$0xf0] }
  0xe1   :  { %1823 = vmatpush.bf16.msrb.mxu1 %v2558_v9  ;;  %v3189_v9 = vld [vmem:[#allocation4 + $0x418] sm:$0xf0]  ;;  %v2166_v27 = vor.u32 %v3063_v16, %v2165_v14  ;;  %v2506_v14 = vor.u32 %v3144_v5, %v2503_v6  ;;  %v2251_v16 = vld [vmem:[#allocation4 + $0xd4] sm:$0xf0] }
  0xe2   :  { %1791 = vmatmul.bf16.vlgmr.msra.gmra.mxu2 %v3426_v4  ;;  %v2670_v19 = vor.u32 %v3189_v9, %v2669_v8  ;;  %v3207_v8 = vld [vmem:[#allocation4 + $0x4ac] sm:$0xf]  ;;  %v2755_v9 = vld [vmem:[#allocation4 + $0x4c4] sm:$0xf0] }
  0xe3   :  { %1835 = vmatpush.bf16.msrb.mxu2 %v2810_v17  ;;  %1804 = vmatmul.bf16.vlgmr.msra.gmra.mxu3 %v3428_v10  ;;  %v2389_v17 = vld [vmem:[#allocation4 + $0x1d0] sm:$0xf] }
  0xe4   :  { %1848 = vmatpush.bf16.msrb.mxu3 %v3034_v20  ;;  %1811 = vmatpush.bf16.msrb.mxu0 %v2306_v23  ;;  %v3109_v20 = vld [vmem:[#allocation4 + $0x19c] sm:$0xf]  ;;  %v2894_v23 = vor.u32 %v3245_v13, %v2893_v12  ;;  %v2390_v30 = vor.u32 %v3119_v18, %v2389_v17  ;;  %v3263_v12 = vld [vmem:[#allocation4 + $0x66c] sm:$0xf]  ;;  %v2979_v13 = vld [vmem:[#allocation4 + $0x684] sm:$0xf0]  ;;  %v2758_v17 = vor.u32 %v3207_v8, %v2755_v9 }
  0xe5   :  { %1824 = vmatpush.bf16.msrb.mxu1 %v2530_v26  ;;  %v3182_v26 = vld [vmem:[#allocation4 + $0x3e0] sm:$0xf0]  ;;  %v2366_v31 = vor.u32 %v3109_v20, %v2363_v21  ;;  %v3137_v18 = vld [vmem:[#allocation4 + $0x27c] sm:$0xf]  ;;  %v2982_v20 = vor.u32 %v3263_v12, %v2979_v13  ;;  %v3200_v21 = vld [vmem:[#allocation4 + $0x474] sm:$0xf] }
  0xe6   :  { %v2642_v34 = vor.u32 %v3182_v26, %v2641_v25  ;;  %v2951_v25 = vld [vmem:[#allocation4 + $0x64c] sm:$0xf0]  ;;  %v2565_v12 = vld [vmem:[#allocation4 + $0x328] sm:$0xf]  ;;  %v3162_v13 = vld [vmem:[#allocation4 + $0x340] sm:$0xf0] }
  0xe7   :  { %1836 = vmatpush.bf16.msrb.mxu2 %v2782_v29  ;;  %v3238_v29 = vld [vmem:[#allocation4 + $0x5a0] sm:$0xf0] }
  0xe8   :  { %1849 = vmatpush.bf16.msrb.mxu3 %v3006_v32  ;;  %1812 = vmatpush.bf16.msrb.mxu0 %v2278_v35  ;;  %v3102_v32 = vld [vmem:[#allocation4 + $0x164] sm:$0xf]  ;;  %v2335_v35 = vld [vmem:[#allocation4 + $0x17c] sm:$0xf0] }
  0xe9   :  { %1825 = vmatpush.bf16.msrb.mxu1 %v2502_v38  ;;  %v2866_v38 = vor.u32 %v3238_v29, %v2865_v28  ;;  %v2338_v47 = vor.u32 %v3102_v32, %v2335_v35  ;;  %v2223_v28 = vld [vmem:[#allocation4 + $0x9c] sm:$0xf0]  ;;  %v2730_v29 = vor.u32 %v3200_v21, %v2727_v22  ;;  %v2954_v32 = vor.u32 %v3256_v24, %v2951_v25 }
  0xea   :  { %v3041_v22 = vld [vmem:[#allocation4 + $0x6e0] sm:$0xf]  ;;  %v2566_v24 = vor.u32 %v3162_v13, %v2565_v12  ;;  %v3134_v12 = vld [vmem:[#allocation4 + $0x260] sm:$0xf0] }
  0xeb   :  { %1837 = vmatpush.bf16.msrb.mxu2 %v2754_v42  ;;  %v2837_v42 = vld [vmem:[#allocation4 + $0x550] sm:$0xf] }
  0xec   :  { %1850 = vmatpush.bf16.msrb.mxu3 %v2978_v45  ;;  %1813 = vmatpush.bf16.msrb.mxu0 %v2250_v49  ;;  %v2811_v45 = vld [vmem:[#allocation4 + $0x534] sm:$0xf0]  ;;  %v2838_v54 = vor.u32 %v3231_v43, %v2837_v42  ;;  %v3123_v43 = vld [vmem:[#allocation4 + $0x20c] sm:$0xf] }
  0xed   :  { %1826 = vmatpush.bf16.msrb.mxu1 %v2474_v52  ;;  %v3035_v49 = vld [vmem:[#allocation4 + $0x6f4] sm:$0xf0]  ;;  %v3095_v52 = vld [vmem:[#allocation4 + $0x12c] sm:$0xf] }
  0xef   :  { %1838 = vmatpush.bf16.msrb.mxu2 %v2726_v55  ;;  %v2814_v55 = vor.u32 %v3221_v44, %v2811_v45  ;;  %v2419_v44 = vld [vmem:[#allocation4 + $0x224] sm:$0xf0]  ;;  %v2926_v45 = vor.u32 %v3249_v36, %v2923_v37  ;;  %v3274_v37 = vld [vmem:[#allocation4 + $0x6c0] sm:$0xf0] }
  0xf0   :  { %1851 = vmatpush.bf16.msrb.mxu3 %v2950_v58  ;;  %1814 = vmatpush.bf16.msrb.mxu0 %v2222_v61  ;;  %v3038_v58 = vor.u32 %v3277_v48, %v3035_v49  ;;  %v2310_v61 = vor.u32 %v3095_v52, %v2307_v53  ;;  %v2671_v48 = vld [vmem:[#allocation4 + $0x41c] sm:$0xf0]  ;;  %v2198_v49 = vor.u32 %v3067_v39, %v2195_v40  ;;  %v3060_v52 = vld [vmem:[#allocation4 + $0x14] sm:$0xf]  ;;  %v3013_v36 = vld [vmem:[#allocation4 + $0x6a8] sm:$0xf] }
  0xf1   :  { %1827 = vmatpush.bf16.msrb.mxu1 %v2446_v0  ;;  %v2534_v0 = vor.u32 %v3151_v56, %v2531_v57  ;;  %v2422_v53 = vor.u32 %v3123_v43, %v2419_v44  ;;  %v2391_v56 = vld [vmem:[#allocation4 + $0x1ec] sm:$0xf0]  ;;  %v2285_v39 = vld [vmem:[#allocation4 + $0xf8] sm:$0xf]  ;;  %v3092_v40 = vld [vmem:[#allocation4 + $0x110] sm:$0xf0] }
  0xf2   :  { %v2509_v44 = vld [vmem:[#allocation4 + $0x2b8] sm:$0xf] }
  0xf3   :  { %1839 = vmatpush.bf16.msrb.mxu2 %v2698_v3  ;;  %v2786_v3 = vor.u32 %v3214_v59, %v2783_v60  ;;  %v3113_v59 = vld [vmem:[#allocation4 + $0x1b8] sm:$0xf0]  ;;  %v2593_v60 = vld [vmem:[#allocation4 + $0x360] sm:$0xf] }
  0xf4   :  { %1852 = vmatpush.bf16.msrb.mxu3 %v2922_v7  ;;  %1815 = vmatpush.bf16.msrb.mxu0 %v2194_v11  ;;  %v3010_v7 = vor.u32 %v3270_v62, %v3007_v63  ;;  %v2282_v11 = vor.u32 %v3088_v1, %v2279_v2  ;;  %v3169_v62 = vld [vmem:[#allocation4 + $0x378] sm:$0xf0]  ;;  %v3179_v63 = vld [vmem:[#allocation4 + $0x3cc] sm:$0xf] }
  0xf5   :  { %1828 = vmatpush.bf16.msrb.mxu1 %v2418_v15  ;;  %v3081_v15 = vld [vmem:[#allocation4 + $0xbc] sm:$0xf]  ;;  %v3235_v2 = vld [vmem:[#allocation4 + $0x58c] sm:$0xf]  ;;  %v2594_v8 = vor.u32 %v3169_v62, %v2593_v60  ;;  %v2481_v60 = vld [vmem:[#allocation4 + $0x280] sm:$0xf] }
  0xf7   :  { %1840 = vmatpush.bf16.msrb.mxu2 %v2670_v19  ;;  %v2475_v19 = vld [vmem:[#allocation4 + $0x294] sm:$0xf0] }
  0xf8   :  { %1853 = vmatpush.bf16.msrb.mxu3 %v2894_v23  ;;  %1816 = vmatpush.bf16.msrb.mxu0 %v2166_v27  ;;  %v2254_v23 = vor.u32 %v3081_v15, %v2251_v16  ;;  %v2478_v26 = vor.u32 %v3137_v18, %v2475_v19  ;;  %v3074_v27 = vld [vmem:[#allocation4 + $0x84] sm:$0xf]  ;;  %v3172_v15 = vld [vmem:[#allocation4 + $0x394] sm:$0xf]  ;;  %v2615_v16 = vld [vmem:[#allocation4 + $0x3ac] sm:$0xf0] }
  0xf9   :  { %1829 = vmatpush.bf16.msrb.mxu1 %v2390_v30  ;;  %v3130_v30 = vld [vmem:[#allocation4 + $0x244] sm:$0xf]  ;;  %v2226_v35 = vor.u32 %v3074_v27, %v2223_v28  ;;  %v2839_v18 = vld [vmem:[#allocation4 + $0x56c] sm:$0xf0]  ;;  %v2817_v19 = vld [vmem:[#allocation4 + $0x520] sm:$0xf]  ;;  %v2618_v25 = vor.u32 %v3172_v15, %v2615_v16 }
  0xfa   :  { %v3099_v27 = vld [vmem:[#allocation4 + $0x148] sm:$0xf0]  ;;  %v2705_v15 = vld [vmem:[#allocation4 + $0x440] sm:$0xf]  ;;  %v3197_v16 = vld [vmem:[#allocation4 + $0x458] sm:$0xf0] }
  0xfb   :  { %1841 = vmatpush.bf16.msrb.mxu2 %v2642_v34  ;;  %1817 = vmatmul.bf16.vlgmr.msrb.gmra.mxu0 %v3420_v41  ;;  %v2699_v34 = vld [vmem:[#allocation4 + $0x454] sm:$0xf0] }
  0xfc   :  { %1861 = vmatpush.bf16.msra.mxu0 %v2366_v31  ;;  %1854 = vmatpush.bf16.msrb.mxu3 %v2866_v38  ;;  %v2447_v31 = vld [vmem:[#allocation4 + $0x25c] sm:$0xf0] }
  0xfd   :  { %1874 = vmatpush.bf16.msra.mxu1 %v2590_v33  ;;  %v3193_v33 = vld [vmem:[#allocation4 + $0x43c] sm:$0xf]  ;;  %v2450_v38 = vor.u32 %v3130_v30, %v2447_v31  ;;  %v2537_v30 = vld [vmem:[#allocation4 + $0x2f0] sm:$0xf]  ;;  %v3155_v31 = vld [vmem:[#allocation4 + $0x308] sm:$0xf0] }
  0xfe   :  { %1830 = vmatmul.bf16.vlgmr.msrb.gmra.mxu1 %v3422_v46  ;;  %v2702_v42 = vor.u32 %v3193_v33, %v2699_v34  ;;  %v2789_v33 = vld [vmem:[#allocation4 + $0x4e8] sm:$0xf]  ;;  %v3218_v34 = vld [vmem:[#allocation4 + $0x500] sm:$0xf0] }
  0xff   :  { %1842 = vmatpush.bf16.msrb.mxu2 %v2614_v51  ;;  %v2895_v51 = vld [vmem:[#allocation4 + $0x5dc] sm:$0xf0]  ;;  %v2790_v43 = vor.u32 %v3218_v34, %v2789_v33  ;;  %v2901_v33 = vld [vmem:[#allocation4 + $0x5c8] sm:$0xf]  ;;  %v3246_v34 = vld [vmem:[#allocation4 + $0x5e0] sm:$0xf0] }
 0x100   :  { %1862 = vmatpush.bf16.msra.mxu0 %v2338_v47  ;;  %1855 = vmatpush.bf16.msrb.mxu3 %v2838_v54  ;;  %v3186_v47 = vld [vmem:[#allocation4 + $0x404] sm:$0xf]  ;;  %v2167_v54 = vld [vmem:[#allocation4 + $0x2c] sm:$0xf0] }
 0x101   :  { %1875 = vmatpush.bf16.msra.mxu1 %v2562_v50  ;;  %v3242_v50 = vld [vmem:[#allocation4 + $0x5c4] sm:$0xf]  ;;  %v2674_v57 = vor.u32 %v3186_v47, %v2671_v48  ;;  %v2170_v1 = vor.u32 %v3060_v52, %v2167_v54  ;;  %v3014_v48 = vor.u32 %v3274_v37, %v3013_v36  ;;  %v2286_v52 = vor.u32 %v3092_v40, %v2285_v39  ;;  %v3267_v54 = vld [vmem:[#allocation4 + $0x688] sm:$0xf0]  ;;  %v3064_v39 = vld [vmem:[#allocation4 + $0x30] sm:$0xf0] }
 0x102   :  { %1843 = vmatmul.bf16.vlgmr.msrb.gmra.mxu2 %v3426_v4 }
 0x103   :  { %1887 = vmatpush.bf16.msra.mxu2 %v2814_v55  ;;  %1856 = vmatmul.bf16.vlgmr.msrb.gmra.mxu3 %v3428_v10  ;;  %v3116_v55 = vld [vmem:[#allocation4 + $0x1d4] sm:$0xf] }
 0x104   :  { %1900 = vmatpush.bf16.msra.mxu3 %v3038_v58  ;;  %1863 = vmatpush.bf16.msra.mxu0 %v2310_v61  ;;  %v2369_v58 = vld [vmem:[#allocation4 + $0x1a0] sm:$0xf]  ;;  %v2898_v61 = vor.u32 %v3242_v50, %v2895_v51  ;;  %v2394_v5 = vor.u32 %v3116_v55, %v2391_v56  ;;  %v3211_v50 = vld [vmem:[#allocation4 + $0x4c8] sm:$0xf0] }
 0x105   :  { %1876 = vmatpush.bf16.msra.mxu1 %v2534_v0  ;;  %v2643_v0 = vld [vmem:[#allocation4 + $0x3e4] sm:$0xf0]  ;;  %v2370_v6 = vor.u32 %v3113_v59, %v2369_v58  ;;  %v3085_v58 = vld [vmem:[#allocation4 + $0xd8] sm:$0xf0] }
 0x106   :  { %v2646_v9 = vor.u32 %v3179_v63, %v2643_v0  ;;  %v2733_v63 = vld [vmem:[#allocation4 + $0x478] sm:$0xf]  ;;  %v3204_v0 = vld [vmem:[#allocation4 + $0x490] sm:$0xf0] }
 0x107   :  { %1888 = vmatpush.bf16.msra.mxu2 %v2786_v3  ;;  %v2867_v3 = vld [vmem:[#allocation4 + $0x5a4] sm:$0xf0] }
 0x108   :  { %1901 = vmatpush.bf16.msra.mxu3 %v3010_v7  ;;  %1864 = vmatpush.bf16.msra.mxu0 %v2282_v11  ;;  %v2341_v7 = vld [vmem:[#allocation4 + $0x168] sm:$0xf]  ;;  %v3106_v11 = vld [vmem:[#allocation4 + $0x180] sm:$0xf0] }
 0x109   :  { %1877 = vmatpush.bf16.msra.mxu1 %v2506_v14  ;;  %v2870_v14 = vor.u32 %v3235_v2, %v2867_v3  ;;  %v2342_v21 = vor.u32 %v3106_v11, %v2341_v7  ;;  %v2957_v2 = vld [vmem:[#allocation4 + $0x638] sm:$0xf]  ;;  %v3260_v3 = vld [vmem:[#allocation4 + $0x650] sm:$0xf0]  ;;  %v2229_v7 = vld [vmem:[#allocation4 + $0x88] sm:$0xf] }
 0x10a   :  { %v2453_v11 = vld [vmem:[#allocation4 + $0x248] sm:$0xf] }
 0x10b   :  { %1889 = vmatpush.bf16.msra.mxu2 %v2758_v17  ;;  %v3228_v17 = vld [vmem:[#allocation4 + $0x554] sm:$0xf] }
 0x10c   :  { %1902 = vmatpush.bf16.msra.mxu3 %v2982_v20  ;;  %1865 = vmatpush.bf16.msra.mxu0 %v2254_v23  ;;  %v3225_v20 = vld [vmem:[#allocation4 + $0x538] sm:$0xf0]  ;;  %v2842_v28 = vor.u32 %v3228_v17, %v2839_v18 }
 0x10d   :  { %1878 = vmatpush.bf16.msra.mxu1 %v2478_v26  ;;  %v3281_v23 = vld [vmem:[#allocation4 + $0x6f8] sm:$0xf0]  ;;  %v2313_v26 = vld [vmem:[#allocation4 + $0x130] sm:$0xf] }
 0x10f   :  { %1890 = vmatpush.bf16.msra.mxu2 %v2730_v29  ;;  %v2818_v29 = vor.u32 %v3225_v20, %v2817_v19  ;;  %v2929_v19 = vld [vmem:[#allocation4 + $0x600] sm:$0xf]  ;;  %v3253_v20 = vld [vmem:[#allocation4 + $0x618] sm:$0xf0] }
 0x110   :  { %1903 = vmatpush.bf16.msra.mxu3 %v2954_v32  ;;  %1866 = vmatpush.bf16.msra.mxu0 %v2226_v35  ;;  %v3042_v32 = vor.u32 %v3281_v23, %v3041_v22  ;;  %v2314_v35 = vor.u32 %v3099_v27, %v2313_v26  ;;  %v2454_v22 = vor.u32 %v3134_v12, %v2453_v11  ;;  %v2201_v23 = vld [vmem:[#allocation4 + $0x50] sm:$0xf]  ;;  %v3127_v27 = vld [vmem:[#allocation4 + $0x228] sm:$0xf0] }
 0x111   :  { %1879 = vmatpush.bf16.msra.mxu1 %v2450_v38  ;;  %v2538_v38 = vor.u32 %v3155_v31, %v2537_v30  ;;  %v2425_v26 = vld [vmem:[#allocation4 + $0x210] sm:$0xf]  ;;  %v3190_v30 = vld [vmem:[#allocation4 + $0x420] sm:$0xf0] }
 0x112   :  { %v2426_v37 = vor.u32 %v3127_v27, %v2425_v26 }
 0x113   :  { %1891 = vmatpush.bf16.msra.mxu2 %v2702_v42  ;;  %v3453_v42 = vld [vmem:[%s3493_s4] sm:$0xff] }
 0x114   :  { %1904 = vmatpush.bf16.msra.mxu3 %v2926_v45  ;;  %1867 = vmatpush.bf16.msra.mxu0 %v2198_v49  ;;  %v3148_v45 = vld [vmem:[#allocation4 + $0x2d0] sm:$0xf0]  ;;  %v2761_v49 = vld [vmem:[#allocation4 + $0x4b0] sm:$0xf]  ;;  %v435_v55 = vperm.slane %v3453_v42, 0 }
 0x115   :  { %1880 = vmatpush.bf16.msra.mxu1 %v2422_v53  ;;  %v2985_v53 = vld [vmem:[#allocation4 + $0x670] sm:$0xf]  ;;  %v2510_v56 = vor.u32 %v3148_v45, %v2509_v44  ;;  %v2762_v59 = vor.u32 %v3211_v50, %v2761_v49  ;;  %v3120_v44 = vld [vmem:[#allocation4 + $0x1f0] sm:$0xf0]  ;;  %v3183_v50 = vld [vmem:[#allocation4 + $0x3e8] sm:$0xf0] }
 0x116   :  { %v2986_v62 = vor.u32 %v3267_v54, %v2985_v53  ;;  %v2649_v49 = vld [vmem:[#allocation4 + $0x3d0] sm:$0xf]  ;;  %v3239_v54 = vld [vmem:[#allocation4 + $0x5a8] sm:$0xf0] }
 0x117   :  { %1892 = vmatpush.bf16.msra.mxu2 %v2674_v57  ;;  %v1610_v47 = vpop.f32.mrf.mxu0  ;;  %v2257_v57 = vld [vmem:[#allocation4 + $0xc0] sm:$0xf]  ;;  %v2873_v53 = vld [vmem:[#allocation4 + $0x590] sm:$0xf] }
 0x118   :  { %1905 = vmatpush.bf16.msra.mxu3 %v2898_v61  ;;  %1868 = vmatpush.bf16.msra.mxu0 %v2170_v1  ;;  %v1623_v51 = vpop.f32.mrf.mxu1  ;;  %v3141_v61 = vld [vmem:[#allocation4 + $0x298] sm:$0xf0]  ;;  %v2258_v1 = vor.u32 %v3085_v58, %v2257_v57  ;;  %v2650_v57 = vor.u32 %v3183_v50, %v2649_v49  ;;  %v436_v58 = vperm.slane %v3453_v42, 1 }
 0x119   :  { %1881 = vmatpush.bf16.msra.mxu1 %v2394_v5  ;;  %v1611_v5 = vadd.f32 %v1610_v47, %v435_v55 }
 0x11b   :  { %1893 = vmatpush.bf16.msra.mxu2 %v2646_v9  ;;  %1869 = vmatmul.bf16.vlgmr.msra.gmra.mxu0 %v3420_v41  ;;  %v2734_v9 = vor.u32 %v3204_v0, %v2733_v63  ;;  %v2845_v63 = vld [vmem:[#allocation4 + $0x558] sm:$0xf]  ;;  %v3232_v0 = vld [vmem:[#allocation4 + $0x570] sm:$0xf0] }
 0x11c   :  { %1913 = vmatpush.bf16.msrb.mxu0 %v2370_v6  ;;  %1906 = vmatpush.bf16.msra.mxu3 %v2870_v14  ;;  %v2482_v6 = vor.u32 %v3141_v61, %v2481_v60  ;;  %v2958_v14 = vor.u32 %v3260_v3, %v2957_v2  ;;  %v2621_v60 = vld [vmem:[#allocation4 + $0x398] sm:$0xf]  ;;  %v3176_v61 = vld [vmem:[#allocation4 + $0x3b0] sm:$0xf0] }
 0x11d   :  { %1926 = vmatpush.bf16.msrb.mxu1 %v2594_v8  ;;  %v3078_v8 = vld [vmem:[#allocation4 + $0xa0] sm:$0xf0]  ;;  %v2622_v2 = vor.u32 %v3176_v61, %v2621_v60 }
 0x11e   :  { %1882 = vmatmul.bf16.vlgmr.msra.gmra.mxu1 %v3422_v46  ;;  %v2230_v18 = vor.u32 %v3078_v8, %v2229_v7 }
 0x11f   :  { %1894 = vmatpush.bf16.msra.mxu2 %v2618_v25  ;;  %v1612_v13 = vpop.f32.mrf.mxu0  ;;  %v2706_v25 = vor.u32 %v3197_v16, %v2705_v15 }
 0x120   :  { %1914 = vmatpush.bf16.msrb.mxu0 %v2342_v21  ;;  %1907 = vmatpush.bf16.msra.mxu3 %v2842_v28  ;;  %v1625_v17 = vpop.f32.mrf.mxu1  ;;  %v1624_v21 = vadd.f32 %v1623_v51, %v1611_v5  ;;  %v2930_v28 = vor.u32 %v3253_v20, %v2929_v19  ;;  %v437_v19 = vperm.slane %v3453_v42, 2 }
 0x121   :  { %1927 = vmatpush.bf16.msrb.mxu1 %v2566_v24  ;;  %v3071_v24 = vld [vmem:[#allocation4 + $0x68] sm:$0xf0] }
 0x122   :  { %1895 = vmatmul.bf16.vlgmr.msra.gmra.mxu2 %v3426_v4 }
 0x123   :  { %1939 = vmatpush.bf16.msrb.mxu2 %v2818_v29  ;;  %1908 = vmatmul.bf16.vlgmr.msra.gmra.mxu3 %v3428_v10  ;;  %v2677_v29 = vld [vmem:[#allocation4 + $0x408] sm:$0xf] }
 0x124   :  { %1952 = vmatpush.bf16.msrb.mxu3 %v3042_v32  ;;  %1915 = vmatpush.bf16.msrb.mxu0 %v2314_v35  ;;  %v2202_v32 = vor.u32 %v3071_v24, %v2201_v23  ;;  %v2678_v40 = vor.u32 %v3190_v30, %v2677_v29 }
 0x125   :  { %1928 = vmatpush.bf16.msrb.mxu1 %v2538_v38  ;;  %v1636_v31 = vpop.f32.mrf.mxu2  ;;  %v2173_v38 = vld [vmem:[#allocation4 + $0x18] sm:$0xf] }
 0x126   :  { %v1637_v35 = vadd.f32 %v1636_v31, %v1624_v21  ;;  %v1649_v36 = vpop.f32.mrf.mxu3 }
 0x127   :  { %1940 = vmatpush.bf16.msrb.mxu2 %v2790_v43  ;;  %v2397_v43 = vld [vmem:[#allocation4 + $0x1d8] sm:$0xf]  ;;  %v1662_v47 = vpop.f32.mrf.mxu0 }
 0x128   :  { %1953 = vmatpush.bf16.msrb.mxu3 %v3014_v48  ;;  %1916 = vmatpush.bf16.msrb.mxu0 %v2286_v52  ;;  %v1650_v45 = vadd.f32 %v1649_v36, %v1637_v35  ;;  %v2902_v48 = vor.u32 %v3246_v34, %v2901_v33  ;;  %v1675_v51 = vpop.f32.mrf.mxu1  ;;  %v2174_v52 = vor.u32 %v3064_v39, %v2173_v38 }
 0x129   :  { %1929 = vmatpush.bf16.msrb.mxu1 %v2510_v56  ;;  %v2398_v56 = vor.u32 %v3120_v44, %v2397_v43  ;;  %v1663_v3 = vadd.f32 %v1662_v47, %v436_v58  ;;  %v438_v58 = vperm.slane %v3453_v42, 3 }
 0x12a   :  { %v3043_v55 = vmul.f32 -1.442695, %v1650_v45 }
 0x12b   :  { %1941 = vmatpush.bf16.msrb.mxu2 %v2762_v59  ;;  %v2874_v59 = vor.u32 %v3239_v54, %v2873_v53  ;;  %v1676_v11 = vadd.f32 %v1675_v51, %v1663_v3 }
 0x12c   :  { %1954 = vmatpush.bf16.msrb.mxu3 %v2986_v62  ;;  %1917 = vmatpush.bf16.msrb.mxu0 %v2258_v1  ;;  %3288 = vpow2.f32 %v3043_v55 }
 0x12d   :  { %1930 = vmatpush.bf16.msrb.mxu1 %v2482_v6  ;;  %v1638_v62 = vpop.f32.mrf.mxu2  ;;  %v2846_v6 = vor.u32 %v3232_v0, %v2845_v63 }
 0x12e   :  { %v1651_v1 = vpop.f32.mrf.mxu3 }
 0x12f   :  { %1942 = vmatpush.bf16.msrb.mxu2 %v2734_v9  ;;  %v1664_v5 = vpop.f32.mrf.mxu0 }
 0x130   :  { %1955 = vmatpush.bf16.msrb.mxu3 %v2958_v14  ;;  %1918 = vmatpush.bf16.msrb.mxu0 %v2230_v18  ;;  %v1677_v7 = vpop.f32.mrf.mxu1 }
 0x131   :  { %1931 = vmatpush.bf16.msrb.mxu1 %v2454_v22 }
 0x132   :  { %v3289_v8 = vpop.eup %3288 }
 0x133   :  { %1943 = vmatpush.bf16.msrb.mxu2 %v2706_v25  ;;  %v1986_v9 = vadd.f32 1.0, %v3289_v8 }
 0x134   :  { %1956 = vmatpush.bf16.msrb.mxu3 %v2930_v28  ;;  %1919 = vmatpush.bf16.msrb.mxu0 %v2202_v32 }
 0x135   :  { %1932 = vmatpush.bf16.msrb.mxu1 %v2426_v37  ;;  %3290 = vrcp.f32 %v1986_v9  ;;  %v1688_v12 = vpop.f32.mrf.mxu2  ;;  %v2004_v23 = vand.u32 2147483648, %v1986_v9  ;;  %v2002_v25 = vand.u32 2147483647, %v1986_v9  ;;  %vm1998_vm2 = vweird.f32 %v1986_v9 }
 0x136   :  { %v1689_v13 = vadd.f32 %v1688_v12, %v1676_v11  ;;  %v1701_v14 = vpop.f32.mrf.mxu3 }
 0x137   :  { %1944 = vmatpush.bf16.msrb.mxu2 %v2678_v40  ;;  %v2005_v29 = vor.u32 1.1754944e-38, %v2004_v23  ;;  %vm2003_vm4 = vcmp.eq.f32.partialorder %v2002_v25, 8.507059e+37 }
 0x138   :  { %1957 = vmatpush.bf16.msrb.mxu3 %v2902_v48  ;;  %1920 = vmatpush.bf16.msrb.mxu0 %v2174_v52  ;;  %v1702_v15 = vadd.f32 %v1701_v14, %v1689_v13 }
 0x139   :  { %1933 = vmatpush.bf16.msrb.mxu1 %v2398_v56 }
 0x13a   :  { %v3044_v16 = vmul.f32 -1.442695, %v1702_v15 }
 0x13b   :  { %1945 = vmatpush.bf16.msrb.mxu2 %v2650_v57  ;;  %1921 = vmatmul.bf16.vlgmr.msrb.gmra.mxu0 %v3420_v41  ;;  %v1714_v41 = vpop.f32.mrf.mxu0  ;;  %v1727_v17 = vpop.f32.mrf.mxu1 }
 0x13c   :  { %1958 = vmatpush.bf16.msrb.mxu3 %v2874_v59  ;;  %1934 = vmatmul.bf16.vlgmr.msrb.gmra.mxu1 %v3422_v46  ;;  %v3291_v18 = vpop.eup %3290  ;;  %3292 = vpow2.f32 %v3044_v16  ;;  %v1715_v26 = vadd.f32 %v1714_v41, %v437_v19 }
 0x13d   :  { %v1994_v46 = vmul.f32 %v3291_v18, %v1986_v9  ;;  %v1690_v20 = vpop.f32.mrf.mxu2  ;;  %vm1999_vm1 = vweird.f32 %v3291_v18 }
 0x13e   :  { %v1703_v22 = vpop.f32.mrf.mxu3  ;;  %vm2000_vm3 = vmor %vm1998_vm2, %vm1999_vm1  ;;  %v1728_v33 = vadd.f32 %v1727_v17, %v1715_v26  ;;  %v439_v20 = vperm.slane %v3453_v42, 4 }
 0x13f   :  { %1946 = vmatpush.bf16.msrb.mxu2 %v2622_v2  ;;  %v1995_v21 = vsub.f32 1.0, %v1994_v46 }
 0x140   :  { %1959 = vmatpush.bf16.msrb.mxu3 %v2846_v6 }
 0x141   :  { %v1996_v24 = vmul.f32 %v3291_v18, %v1995_v21 }
 0x142   :  { %1947 = vmatmul.bf16.vlgmr.msrb.gmra.mxu2 %v3426_v4  ;;  %v3293_v27 = vpop.eup %3292 }
 0x143   :  { %1960 = vmatmul.bf16.vlgmr.msrb.gmra.mxu3 %v3428_v10  ;;  %v1716_v4 = vpop.f32.mrf.mxu0  ;;  %v1997_v10 = vadd.f32 %v3291_v18, %v1996_v24  ;;  %v1729_v28 = vpop.f32.mrf.mxu1  ;;  %v1987_v30 = vadd.f32 1.0, %v3293_v27 }
 0x145   :  { %v2001_v31 = vsel %vm2000_vm3, %v3291_v18, %v1997_v10  ;;  %3294 = vrcp.f32 %v1987_v30  ;;  %v1740_v34 = vpop.f32.mrf.mxu2  ;;  %v2019_v47 = vand.u32 2147483648, %v1987_v30  ;;  %v2017_v49 = vand.u32 2147483647, %v1987_v30 }
 0x146   :  { %v2006_v32 = vsel %vm2003_vm4, %v2005_v29, %v2001_v31  ;;  %v1753_v35 = vpop.f32.mrf.mxu3  ;;  %v1741_v36 = vadd.f32 %v1740_v34, %v1728_v33  ;;  %vm2013_vm6 = vweird.f32 %v1987_v30 }
 0x147   :  { %2098 = vst [vmem:[%s3494_s5] sm:$0xff] %v2006_v32  ;;  %v2020_v52 = vor.u32 1.1754944e-38, %v2019_v47  ;;  %vm2018_vm8 = vcmp.eq.f32.partialorder %v2017_v49, 8.507059e+37  ;;  %v440_v47 = vperm.slane %v3453_v42, 5 }
 0x148   :  { %v1754_v37 = vadd.f32 %v1753_v35, %v1741_v36 }
 0x14a   :  { %v3045_v39 = vmul.f32 -1.442695, %v1754_v37 }
 0x14b   :  { %v3295_v38 = vpop.eup %3294 }
 0x14c   :  { %v2009_v40 = vmul.f32 %v3295_v38, %v1987_v30  ;;  %3296 = vpow2.f32 %v3045_v39  ;;  %vm2014_vm5 = vweird.f32 %v3295_v38 }
 0x14d   :  { %v1742_v44 = vpop.f32.mrf.mxu2  ;;  %vm2015_vm7 = vmor %vm2013_vm6, %vm2014_vm5 }
 0x14e   :  { %v2010_v43 = vsub.f32 1.0, %v2009_v40  ;;  %v1755_v45 = vpop.f32.mrf.mxu3 }
 0x150   :  { %v2011_v48 = vmul.f32 %v3295_v38, %v2010_v43 }
 0x152   :  { %v2012_v50 = vadd.f32 %v3295_v38, %v2011_v48  ;;  %v3297_v51 = vpop.eup %3296 }
 0x153   :  { %v1988_v54 = vadd.f32 1.0, %v3297_v51 }
 0x154   :  { %v2016_v53 = vsel %vm2015_vm7, %v3295_v38, %v2012_v50 }
 0x155   :  { %v2021_v55 = vsel %vm2018_vm8, %v2020_v52, %v2016_v53  ;;  %3298 = vrcp.f32 %v1988_v54  ;;  %v2034_v1 = vand.u32 2147483648, %v1988_v54  ;;  %v2032_v3 = vand.u32 2147483647, %v1988_v54 }
 0x156   :  { %2099 = vst [vmem:[%s3494_s5 + $0x8] sm:$0xff] %v2021_v55  ;;  %vm2028_vm10 = vweird.f32 %v1988_v54 }
 0x157   :  { %v2035_v11 = vor.u32 1.1754944e-38, %v2034_v1  ;;  %vm2033_vm12 = vcmp.eq.f32.partialorder %v2032_v3, 8.507059e+37 }
 0x158   :  { %v1766_v56 = vpop.f32.mrf.mxu0 }
 0x159   :  { %v1767_v61 = vadd.f32 %v1766_v56, %v438_v58 }
 0x15b   :  { %v1779_v57 = vpop.f32.mrf.mxu1  ;;  %v3299_v59 = vpop.eup %3298 }
 0x15c   :  { %v2024_v60 = vmul.f32 %v3299_v59, %v1988_v54  ;;  %vm2029_vm9 = vweird.f32 %v3299_v59  ;;  %v1780_v5 = vadd.f32 %v1779_v57, %v1767_v61 }
 0x15d   :  { %vm2030_vm11 = vmor %vm2028_vm10, %vm2029_vm9 }
 0x15e   :  { %v2025_v63 = vsub.f32 1.0, %v2024_v60 }
 0x160   :  { %v1768_v62 = vpop.f32.mrf.mxu0  ;;  %v2026_v2 = vmul.f32 %v3299_v59, %v2025_v63 }
 0x162   :  { %v2027_v7 = vadd.f32 %v3299_v59, %v2026_v2 }
 0x163   :  { %v1781_v0 = vpop.f32.mrf.mxu1 }
 0x164   :  { %v2031_v12 = vsel %vm2030_vm11, %v3299_v59, %v2027_v7 }
 0x165   :  { %v1792_v6 = vpop.f32.mrf.mxu2  ;;  %v2036_v14 = vsel %vm2033_vm12, %v2035_v11, %v2031_v12  ;;  %v441_v11 = vperm.slane %v3453_v42, 6 }
 0x166   :  { %v1793_v8 = vadd.f32 %v1792_v6, %v1780_v5  ;;  %v1805_v9 = vpop.f32.mrf.mxu3  ;;  %2100 = vst [vmem:[%s3494_s5 + $0x10] sm:$0xff] %v2036_v14 }
 0x168   :  { %v1806_v13 = vadd.f32 %v1805_v9, %v1793_v8 }
 0x16a   :  { %v3046_v15 = vmul.f32 -1.442695, %v1806_v13 }
 0x16c   :  { %3300 = vpow2.f32 %v3046_v15 }
 0x16d   :  { %v1794_v41 = vpop.f32.mrf.mxu2 }
 0x16e   :  { %v1807_v16 = vpop.f32.mrf.mxu3 }
 0x172   :  { %v3301_v17 = vpop.eup %3300 }
 0x173   :  { %v1989_v18 = vadd.f32 1.0, %v3301_v17 }
 0x175   :  { %3302 = vrcp.f32 %v1989_v18  ;;  %v2049_v26 = vand.u32 2147483648, %v1989_v18  ;;  %v2047_v10 = vand.u32 2147483647, %v1989_v18  ;;  %vm2043_vm14 = vweird.f32 %v1989_v18 }
 0x177   :  { %v2050_v31 = vor.u32 1.1754944e-38, %v2049_v26  ;;  %vm2048_vm0 = vcmp.eq.f32.partialorder %v2047_v10, 8.507059e+37 }
 0x178   :  { %v1818_v46 = vpop.f32.mrf.mxu0 }
 0x179   :  { %v1819_v23 = vadd.f32 %v1818_v46, %v439_v20 }
 0x17b   :  { %v1831_v19 = vpop.f32.mrf.mxu1  ;;  %v3303_v21 = vpop.eup %3302 }
 0x17c   :  { %v2039_v22 = vmul.f32 %v3303_v21, %v1989_v18  ;;  %vm2044_vm13 = vweird.f32 %v3303_v21  ;;  %v1832_v28 = vadd.f32 %v1831_v19, %v1819_v23 }
 0x17d   :  { %vm2045_vm15 = vmor %vm2043_vm14, %vm2044_vm13 }
 0x17e   :  { %v2040_v24 = vsub.f32 1.0, %v2039_v22 }
 0x180   :  { %v1820_v25 = vpop.f32.mrf.mxu0  ;;  %v2041_v27 = vmul.f32 %v3303_v21, %v2040_v24 }
 0x182   :  { %v2042_v29 = vadd.f32 %v3303_v21, %v2041_v27 }
 0x183   :  { %v1833_v4 = vpop.f32.mrf.mxu1 }
 0x184   :  { %v2046_v34 = vsel %vm2045_vm15, %v3303_v21, %v2042_v29 }
 0x185   :  { %v1844_v30 = vpop.f32.mrf.mxu2  ;;  %v2051_v35 = vsel %vm2048_vm0, %v2050_v31, %v2046_v34 }
 0x186   :  { %v1845_v32 = vadd.f32 %v1844_v30, %v1832_v28  ;;  %v1857_v33 = vpop.f32.mrf.mxu3  ;;  %2101 = vst [vmem:[%s3494_s5 + $0x18] sm:$0xff] %v2051_v35 }
 0x188   :  { %v1858_v36 = vadd.f32 %v1857_v33, %v1845_v32 }
 0x18a   :  { %v3047_v37 = vmul.f32 -1.442695, %v1858_v36 }
 0x18c   :  { %3304 = vpow2.f32 %v3047_v37 }
 0x18d   :  { %v1846_v38 = vpop.f32.mrf.mxu2 }
 0x18e   :  { %v1859_v39 = vpop.f32.mrf.mxu3 }
 0x192   :  { %v3305_v40 = vpop.eup %3304 }
 0x193   :  { %v1990_v43 = vadd.f32 1.0, %v3305_v40 }
 0x195   :  { %3306 = vrcp.f32 %v1990_v43  ;;  %v2064_v53 = vand.u32 2147483648, %v1990_v43  ;;  %v2062_v56 = vand.u32 2147483647, %v1990_v43  ;;  %vm2058_vm2 = vweird.f32 %v1990_v43 }
 0x197   :  { %v2065_v60 = vor.u32 1.1754944e-38, %v2064_v53  ;;  %vm2063_vm4 = vcmp.eq.f32.partialorder %v2062_v56, 8.507059e+37 }
 0x198   :  { %v1870_v44 = vpop.f32.mrf.mxu0 }
 0x199   :  { %v1871_v50 = vadd.f32 %v1870_v44, %v440_v47 }
 0x19b   :  { %v1883_v45 = vpop.f32.mrf.mxu1  ;;  %v3307_v48 = vpop.eup %3306 }
 0x19c   :  { %v2054_v49 = vmul.f32 %v3307_v48, %v1990_v43  ;;  %vm2059_vm1 = vweird.f32 %v3307_v48  ;;  %v1884_v57 = vadd.f32 %v1883_v45, %v1871_v50 }
 0x19d   :  { %vm2060_vm3 = vmor %vm2058_vm2, %vm2059_vm1 }
 0x19e   :  { %v2055_v51 = vsub.f32 1.0, %v2054_v49 }
 0x1a0   :  { %v1872_v52 = vpop.f32.mrf.mxu0  ;;  %v2056_v55 = vmul.f32 %v3307_v48, %v2055_v51 }
 0x1a2   :  { %v2057_v58 = vadd.f32 %v3307_v48, %v2056_v55 }
 0x1a3   :  { %v1885_v54 = vpop.f32.mrf.mxu1 }
 0x1a4   :  { %v2061_v63 = vsel %vm2060_vm3, %v3307_v48, %v2057_v58 }
 0x1a5   :  { %v1896_v59 = vpop.f32.mrf.mxu2  ;;  %v2066_v0 = vsel %vm2063_vm4, %v2065_v60, %v2061_v63 }
 0x1a6   :  { %v1897_v61 = vadd.f32 %v1896_v59, %v1884_v57  ;;  %v1909_v62 = vpop.f32.mrf.mxu3  ;;  %2102 = vst [vmem:[%s3494_s5 + $0x20] sm:$0xff] %v2066_v0 }
 0x1a8   :  { %v1910_v1 = vadd.f32 %v1909_v62, %v1897_v61 }
 0x1aa   :  { %v3048_v2 = vmul.f32 -1.442695, %v1910_v1 }
 0x1ac   :  { %3308 = vpow2.f32 %v3048_v2 }
 0x1ad   :  { %v1898_v3 = vpop.f32.mrf.mxu2 }
 0x1ae   :  { %v1911_v5 = vpop.f32.mrf.mxu3 }
 0x1b2   :  { %v3309_v6 = vpop.eup %3308 }
 0x1b3   :  { %v1991_v7 = vadd.f32 1.0, %v3309_v6 }
 0x1b5   :  { %3310 = vrcp.f32 %v1991_v7  ;;  %v2079_v16 = vand.u32 2147483648, %v1991_v7  ;;  %v2077_v46 = vand.u32 2147483647, %v1991_v7  ;;  %vm2073_vm6 = vweird.f32 %v1991_v7 }
 0x1b7   :  { %v2080_v22 = vor.u32 1.1754944e-38, %v2079_v16  ;;  %vm2078_vm8 = vcmp.eq.f32.partialorder %v2077_v46, 8.507059e+37 }
 0x1b8   :  { %v1922_v8 = vpop.f32.mrf.mxu0 }
 0x1b9   :  { %v1935_v9 = vpop.f32.mrf.mxu1  ;;  %v1923_v14 = vadd.f32 %v1922_v8, %v441_v11 }
 0x1bb   :  { %v3311_v12 = vpop.eup %3310  ;;  %v1936_v19 = vadd.f32 %v1935_v9, %v1923_v14 }
 0x1bc   :  { %v2069_v13 = vmul.f32 %v3311_v12, %v1991_v7  ;;  %vm2074_vm5 = vweird.f32 %v3311_v12 }
 0x1bd   :  { %vm2075_vm7 = vmor %vm2073_vm6, %vm2074_vm5 }
 0x1be   :  { %v2070_v15 = vsub.f32 1.0, %v2069_v13 }
 0x1c0   :  { %v1924_v41 = vpop.f32.mrf.mxu0  ;;  %v2071_v18 = vmul.f32 %v3311_v12, %v2070_v15 }
 0x1c1   :  { %v1937_v17 = vpop.f32.mrf.mxu1 }
 0x1c2   :  { %v2072_v20 = vadd.f32 %v3311_v12, %v2071_v18 }
 0x1c4   :  { %v2076_v25 = vsel %vm2075_vm7, %v3311_v12, %v2072_v20 }
 0x1c5   :  { %v1948_v21 = vpop.f32.mrf.mxu2  ;;  %v2081_v42 = vsel %vm2078_vm8, %v2080_v22, %v2076_v25 }
 0x1c6   :  { %v1949_v23 = vadd.f32 %v1948_v21, %v1936_v19  ;;  %v1961_v24 = vpop.f32.mrf.mxu3  ;;  %2103 = vst [vmem:[%s3494_s5 + $0x28] sm:$0xff] %v2081_v42 }
 0x1c8   :  { %v1962_v26 = vadd.f32 %v1961_v24, %v1949_v23 }
 0x1ca   :  { %v3049_v4 = vmul.f32 -1.442695, %v1962_v26 }
 0x1cc   :  { %3312 = vpow2.f32 %v3049_v4 }
 0x1cd   :  { %v1950_v27 = vpop.f32.mrf.mxu2 }
 0x1ce   :  { %v1963_v10 = vpop.f32.mrf.mxu3 }
 0x1d2   :  { %v3313_v28 = vpop.eup %3312 }
 0x1d3   :  { %v1992_v29 = vadd.f32 1.0, %v3313_v28 }
 0x1d5   :  { %3314 = vrcp.f32 %v1992_v29  ;;  %v2094_v33 = vand.u32 2147483648, %v1992_v29  ;;  %v2092_v35 = vand.u32 2147483647, %v1992_v29  ;;  %vm2088_vm10 = vweird.f32 %v1992_v29 }
 0x1d7   :  { %v2095_v37 = vor.u32 1.1754944e-38, %v2094_v33  ;;  %vm2093_vm12 = vcmp.eq.f32.partialorder %v2092_v35, 8.507059e+37 }
 0x1db   :  { %v3315_v30 = vpop.eup %3314 }
 0x1dc   :  { %v2084_v31 = vmul.f32 %v3315_v30, %v1992_v29  ;;  %vm2089_vm9 = vweird.f32 %v3315_v30 }
 0x1dd   :  { %vm2090_vm11 = vmor %vm2088_vm10, %vm2089_vm9 }
 0x1de   :  { %v2085_v32 = vsub.f32 1.0, %v2084_v31 }
 0x1e0   :  { %v2086_v34 = vmul.f32 %v3315_v30, %v2085_v32 }
 0x1e2   :  { %v2087_v36 = vadd.f32 %v3315_v30, %v2086_v34 }
 0x1e4   :  { %v2091_v38 = vsel %vm2090_vm11, %v3315_v30, %v2087_v36 }
 0x1e5   :  { %v2096_v39 = vsel %vm2093_vm12, %v2095_v37, %v2091_v38 }
 0x1e6   :  { %2104 = vst [vmem:[%s3494_s5 + $0x30] sm:$0xff] %v2096_v39 }
 0x1e7   :  { %2109 = vsyncpa [#allocation3], 1 }
 0x1e8   :  { %2110 = vsyncpa [#allocation5], 1 }

</bundles_post_ra>
